<compile_context>
chip_gen: v5e
topology: v5e:2x2
jax: 0.10.0
libtpu: 0.0.40
codegen_flags: <defaults>
</compile_context>

<pallas_src>
import math
import functools

import jax
import jax.numpy as jnp
from jax.experimental import pallas as pl
from jax.experimental.pallas import tpu as pltpu

NUM_HEADS = 4
LN_EPS = 1e-5


# ----------------------------------------------------------------------------
# In-kernel helpers (pure jnp, traced inside the kernel)
# ----------------------------------------------------------------------------
def _layer_norm(x, w, b):
    mean = jnp.mean(x, axis=-1, keepdims=True)
    var = jnp.mean(jnp.square(x - mean), axis=-1, keepdims=True)   # two-pass
    inv = jax.lax.rsqrt(var + LN_EPS)
    return (x - mean) * inv * w + b


# ----------------------------------------------------------------------------
# Fused kernel: PE add + all encoder layers + CTC head (one batch element
# per grid column, layers along the inner "arbitrary" grid axis)
# ----------------------------------------------------------------------------
def fused_ctc_kernel(x_ref, pe_ref,
                     wq_ref, bq_ref, wk_ref, bk_ref, wv_ref, bv_ref,
                     wo_ref, bo_ref,
                     n1w_ref, n1b_ref, n2w_ref, n2b_ref,
                     w1_ref, b1_ref, w2_ref, b2_ref,
                     wdec_ref, bdec_ref,
                     o_ref,
                     y_scr):
    layer = pl.program_id(1)
    n_layers = pl.num_programs(1)

    S, E = y_scr.shape
    H = NUM_HEADS
    Dh = E // H
    scale = 1.0 / math.sqrt(Dh)

    # ---- layer 0: fold positional-encoding add into the load ---------------
    @pl.when(layer == 0)
    def _():
        y_scr[...] = (x_ref[0].astype(jnp.float32)
                      + pe_ref[0].astype(jnp.float32))

    y = y_scr[...]                                   # (S, E) fp32, VMEM-resident
    y_bf = y.astype(jnp.bfloat16)

    # ---- self-attention: per-head batched matmuls, no mask -----------------
    yh = jnp.broadcast_to(y_bf[None, :, :], (H, S, E))              # (H,S,E)
    q3 = jnp.einsum('hse,hed->hsd', yh, wq_ref[0],
                    preferred_element_type=jnp.float32) + bq_ref[0]  # (H,S,Dh)
    k3 = jnp.einsum('hse,hed->hsd', yh, wk_ref[0],
                    preferred_element_type=jnp.float32) + bk_ref[0]
    v3 = jnp.einsum('hse,hed->hsd', yh, wv_ref[0],
                    preferred_element_type=jnp.float32) + bv_ref[0]

    s = jnp.einsum('hqd,hkd->hqk',
                   q3.astype(jnp.bfloat16), k3.astype(jnp.bfloat16),
                   preferred_element_type=jnp.float32) * scale       # (H,S,S) f32
    s = s - jnp.max(s, axis=-1, keepdims=True)
    p = jnp.exp(s)
    p = p * pl.reciprocal(jnp.sum(p, axis=-1, keepdims=True), approx=True)

    o3 = jnp.einsum('hqk,hkd->hqd',
                    p.astype(jnp.bfloat16), v3.astype(jnp.bfloat16),
                    preferred_element_type=jnp.float32)              # (H,S,Dh)

    # head-concat fused into the output projection (wo stored (H,Dh,E))
    attn = jnp.einsum('hqd,hde->hqe',
                      o3.astype(jnp.bfloat16), wo_ref[0],
                      preferred_element_type=jnp.float32)            # (H,S,E)
    attn = jnp.sum(attn, axis=0) + bo_ref[0]                         # (S,E)

    # ---- residual + LayerNorm 1 ---------------------------------------------
    y1 = _layer_norm(y + attn, n1w_ref[0], n1b_ref[0])

    # ---- feed-forward (ReLU) -------------------------------------------------
    h1 = jnp.dot(y1.astype(jnp.bfloat16), w1_ref[0],
                 preferred_element_type=jnp.float32) + b1_ref[0]
    h1 = jnp.maximum(h1, 0.0)
    h2 = jnp.dot(h1.astype(jnp.bfloat16), w2_ref[0],
                 preferred_element_type=jnp.float32) + b2_ref[0]

    # ---- residual + LayerNorm 2 ---------------------------------------------
    y2 = _layer_norm(y1 + h2, n2w_ref[0], n2b_ref[0])
    y_scr[...] = y2                                   # carry to next layer

    # ---- last layer: fused CTCRawDecoder (Linear + exact LogSoftmax) --------
    @pl.when(layer == n_layers - 1)
    def _():
        logits = jnp.dot(y2.astype(jnp.bfloat16), wdec_ref[...],
                         preferred_element_type=jnp.float32) + bdec_ref[...]
        z = logits - jnp.max(logits, axis=-1, keepdims=True)
        lse = jnp.log(jnp.sum(jnp.exp(z), axis=-1, keepdims=True))
        o_ref[0] = (z - lse).astype(o_ref.dtype)


# ----------------------------------------------------------------------------
# Wrapper
# ----------------------------------------------------------------------------
def _const_spec(shape):
    zeros = (0,) * len(shape)
    return pl.BlockSpec(shape, lambda b, l, _z=zeros: _z)


def _batch_spec(shape):
    rest = tuple(shape[1:])
    return pl.BlockSpec((1,) + rest, lambda b, l, _n=len(rest): (b,) + (0,) * _n)


def _layer_spec(shape):
    rest = tuple(shape[1:])
    return pl.BlockSpec((1,) + rest, lambda b, l, _n=len(rest): (l,) + (0,) * _n)


def ctc_decoder_forward(x, pe, enc_params, dec_params):
    """x: (B, S, E) backbone/chunker features. Returns log-probs (B, S, vocab)."""
    B, S, E = x.shape
    assert E % NUM_HEADS == 0
    wdec, bdec = dec_params
    V = wdec.shape[1]
    L = enc_params[0].shape[0]

    pe_s = pe[:, :S, :]

    in_specs = ([_batch_spec((B, S, E)), _const_spec((1, S, E))]
                + [_layer_spec(p.shape) for p in enc_params]
                + [_const_spec(wdec.shape), _const_spec(bdec.shape)])

    return pl.pallas_call(
        fused_ctc_kernel,
        out_shape=jax.ShapeDtypeStruct((B, S, V), jnp.float32),
        grid=(B, L),
        in_specs=in_specs,
        out_specs=_batch_spec((B, S, V)),
        scratch_shapes=[pltpu.VMEM((S, E), jnp.float32)],
        compiler_params=pltpu.CompilerParams(
            dimension_semantics=("parallel", "arbitrary"),   # batch || , layers seq
            vmem_limit_bytes=32 * 1024 * 1024),
    )(x, pe_s, *enc_params, wdec, bdec)


# ----------------------------------------------------------------------------
# Deterministic parameter construction. PyTorch-shaped params are generated,
# then converted to the kernel layout: head-split, pre-transposed, bf16 for
# every MXU operand (biases / LayerNorm params stay fp32).
# ----------------------------------------------------------------------------
def make_positional_encoding(in_features, max_len=1000):
    assert in_features % 2 == 0
    position = jnp.arange(max_len, dtype=jnp.float32)[:, None]
    div_term = jnp.exp(jnp.arange(0, in_features, 2, dtype=jnp.float32)
                       * (-math.log(10000.0) / in_features))
    sin = jnp.sin(position * div_term)
    cos = jnp.cos(position * div_term)
    pe = jnp.stack([sin, cos], axis=-1).reshape(max_len, in_features)
    return pe[None, :, :]                                    # (1, L, E)


def _uniform(key, shape, fan_in):
    bound = 1.0 / math.sqrt(fan_in)
    return jax.random.uniform(key, shape, jnp.float32, -bound, bound)


def init_encoder_params(key, E, F, L):
    """Returns 16 arrays, each stacked with a leading layer axis L."""
    H, Dh = NUM_HEADS, E // NUM_HEADS
    layer_keys = jax.random.split(key, L)

    def one_layer(k):
        ks = jax.random.split(k, 8)
        # PyTorch-shaped parameters
        w_in = _uniform(ks[0], (3 * E, E), E)       # in_proj_weight
        b_in = _uniform(ks[1], (3 * E,), E)         # in_proj_bias
        w_out = _uniform(ks[2], (E, E), E)          # out_proj.weight
        b_out = _uniform(ks[3], (E,), E)
        w1 = _uniform(ks[4], (F, E), E)             # linear1.weight
        b1 = _uniform(ks[5], (F,), E)
        w2 = _uniform(ks[6], (E, F), F)             # linear2.weight
        b2 = _uniform(ks[7], (E,), F)

        # kernel layout: (H, E, Dh) weight, (H, 1, Dh) bias per q/k/v
        def qkv_w(blk):   # blk: (E, E)  (out_features, in_features)
            return blk.reshape(H, Dh, E).transpose(0, 2, 1).astype(jnp.bfloat16)

        def qkv_b(blk):   # blk: (E,)
            return blk.reshape(H, 1, Dh)

        wq, bq = qkv_w(w_in[0 * E:1 * E]), qkv_b(b_in[0 * E:1 * E])
        wk, bk = qkv_w(w_in[1 * E:2 * E]), qkv_b(b_in[1 * E:2 * E])
        wv, bv = qkv_w(w_in[2 * E:3 * E]), qkv_b(b_in[2 * E:3 * E])
        wo = w_out.T.reshape(H, Dh, E).astype(jnp.bfloat16)      # (H, Dh, E)
        bo = b_out.reshape(1, E)

        n1w = jnp.ones((1, E), jnp.float32)
        n1b = jnp.zeros((1, E), jnp.float32)
        n2w = jnp.ones((1, E), jnp.float32)
        n2b = jnp.zeros((1, E), jnp.float32)

        w1t = w1.T.astype(jnp.bfloat16)     # (E, F)
        b1r = b1.reshape(1, F)
        w2t = w2.T.astype(jnp.bfloat16)     # (F, E)
        b2r = b2.reshape(1, E)

        return (wq, bq, wk, bk, wv, bv, wo, bo,
                n1w, n1b, n2w, n2b, w1t, b1r, w2t, b2r)

    per_layer = [one_layer(k) for k in layer_keys]
    n = len(per_layer[0])
    return tuple(jnp.stack([lp[i] for lp in per_layer], axis=0) for i in range(n))


def init_decoder_params(key, E, vocab_size):
    kw, kb = jax.random.split(key)
    w = _uniform(kw, (vocab_size, E), E)     # PyTorch linear.weight
    b = _uniform(kb, (vocab_size,), E)
    return (w.T.astype(jnp.bfloat16), b.reshape(1, vocab_size))


# ----------------------------------------------------------------------------
if __name__ == "__main__":
    B, S, E = 2, 8, 32          # batch, seq_len (shrunken width), in_features
    F = 4 * E                   # dim_feedforward (config-dependent)
    V = 128                     # vocab_size incl. CTC blank (lane-dense output)
    NUM_LAYERS = 2

    key = jax.random.PRNGKey(0)
    k_x, k_enc, k_dec = jax.random.split(key, 3)

    x = jax.random.normal(k_x, (B, S, E), jnp.float32)
    pe = make_positional_encoding(E, max_len=1000)
    enc_params = init_encoder_params(k_enc, E, F, NUM_LAYERS)
    dec_params = init_decoder_params(k_dec, E, V)

    fwd = jax.jit(functools.partial(ctc_decoder_forward,
                                    pe=pe,
                                    enc_params=enc_params,
                                    dec_params=dec_params))
    out = fwd(x)
    jax.block_until_ready(out)

    assert out.shape == (B, S, V)
    assert bool(jnp.all(jnp.isfinite(out)))
    # log-softmax rows must exponentiate-sum to 1
    assert bool(jnp.allclose(jnp.sum(jnp.exp(out), axis=-1), 1.0, atol=1e-3))
    print("KERNEL_OK")
</pallas_src>

<mosaic_0001>
module attributes {stable_mosaic.version = 11 : i64} {
  func.func @fused_ctc_kernel(%arg0: i32, %arg1: i32, %arg2: memref<1x8x32xf32, #tpu.memory_space<vmem>>, %arg3: memref<1x8x32xf32, #tpu.memory_space<vmem>>, %arg4: memref<1x4x32x8xbf16, #tpu.memory_space<vmem>>, %arg5: memref<1x4x1x8xf32, #tpu.memory_space<vmem>>, %arg6: memref<1x4x32x8xbf16, #tpu.memory_space<vmem>>, %arg7: memref<1x4x1x8xf32, #tpu.memory_space<vmem>>, %arg8: memref<1x4x32x8xbf16, #tpu.memory_space<vmem>>, %arg9: memref<1x4x1x8xf32, #tpu.memory_space<vmem>>, %arg10: memref<1x4x8x32xbf16, #tpu.memory_space<vmem>>, %arg11: memref<1x1x32xf32, #tpu.memory_space<vmem>>, %arg12: memref<1x1x32xf32, #tpu.memory_space<vmem>>, %arg13: memref<1x1x32xf32, #tpu.memory_space<vmem>>, %arg14: memref<1x1x32xf32, #tpu.memory_space<vmem>>, %arg15: memref<1x1x32xf32, #tpu.memory_space<vmem>>, %arg16: memref<1x32x128xbf16, #tpu.memory_space<vmem>>, %arg17: memref<1x1x128xf32, #tpu.memory_space<vmem>>, %arg18: memref<1x128x32xbf16, #tpu.memory_space<vmem>>, %arg19: memref<1x1x32xf32, #tpu.memory_space<vmem>>, %arg20: memref<32x128xbf16, #tpu.memory_space<vmem>>, %arg21: memref<1x128xf32, #tpu.memory_space<vmem>>, %arg22: memref<1x8x128xf32, #tpu.memory_space<vmem>>, %arg23: memref<8x32xf32, #tpu.memory_space<vmem>>) attributes {dimension_semantics = [#tpu.dimension_semantics<parallel>, #tpu.dimension_semantics<arbitrary>], iteration_bounds = array<i64: 2, 2>, scalar_prefetch = 0 : i64, scratch_operands = 1 : i64, tpu.core_type = #tpu.core_type<tc>, window_params = [{transform_indices = @transform_0, window_bounds = array<i64: 1, 8, 32>}, {pipeline_mode = #tpu.pipeline_mode<synchronous>, transform_indices = @transform_1, window_bounds = array<i64: 1, 8, 32>}, {transform_indices = @transform_2, window_bounds = array<i64: 1, 4, 32, 8>}, {transform_indices = @transform_3, window_bounds = array<i64: 1, 4, 1, 8>}, {transform_indices = @transform_4, window_bounds = array<i64: 1, 4, 32, 8>}, {transform_indices = @transform_5, window_bounds = array<i64: 1, 4, 1, 8>}, {transform_indices = @transform_6, window_bounds = array<i64: 1, 4, 32, 8>}, {transform_indices = @transform_7, window_bounds = array<i64: 1, 4, 1, 8>}, {transform_indices = @transform_8, window_bounds = array<i64: 1, 4, 8, 32>}, {transform_indices = @transform_9, window_bounds = array<i64: 1, 1, 32>}, {transform_indices = @transform_10, window_bounds = array<i64: 1, 1, 32>}, {transform_indices = @transform_11, window_bounds = array<i64: 1, 1, 32>}, {transform_indices = @transform_12, window_bounds = array<i64: 1, 1, 32>}, {transform_indices = @transform_13, window_bounds = array<i64: 1, 1, 32>}, {transform_indices = @transform_14, window_bounds = array<i64: 1, 32, 128>}, {transform_indices = @transform_15, window_bounds = array<i64: 1, 1, 128>}, {transform_indices = @transform_16, window_bounds = array<i64: 1, 128, 32>}, {transform_indices = @transform_17, window_bounds = array<i64: 1, 1, 32>}, {pipeline_mode = #tpu.pipeline_mode<synchronous>, transform_indices = @transform_18, window_bounds = array<i64: 32, 128>}, {pipeline_mode = #tpu.pipeline_mode<synchronous>, transform_indices = @transform_19, window_bounds = array<i64: 1, 128>}, {transform_indices = @transform_20, window_bounds = array<i64: 1, 8, 128>}]} {
    %c0_i32 = arith.constant 0 : i32
    %0 = arith.cmpi eq, %arg1, %c0_i32 : i32
    %1 = arith.extui %0 : i1 to i32
    %c0_i32_0 = arith.constant 0 : i32
    %2 = arith.cmpi ne, %1, %c0_i32_0 : i32
    scf.if %2 {
      %c0_82 = arith.constant 0 : index
      %c0_83 = arith.constant 0 : index
      %c0_84 = arith.constant 0 : index
      %132 = vector.load %arg2[%c0_82, %c0_83, %c0_84] : memref<1x8x32xf32, #tpu.memory_space<vmem>>, vector<1x8x32xf32>
      %133 = vector.shape_cast %132 : vector<1x8x32xf32> to vector<8x32xf32>
      %c0_85 = arith.constant 0 : index
      %c0_86 = arith.constant 0 : index
      %c0_87 = arith.constant 0 : index
      %134 = vector.load %arg3[%c0_85, %c0_86, %c0_87] : memref<1x8x32xf32, #tpu.memory_space<vmem>>, vector<1x8x32xf32>
      %135 = vector.shape_cast %134 : vector<1x8x32xf32> to vector<8x32xf32>
      %136 = arith.addf %133, %135 : vector<8x32xf32>
      %c0_88 = arith.constant 0 : index
      %c0_89 = arith.constant 0 : index
      %137 = vector.load %arg23[%c0_88, %c0_89] : memref<8x32xf32, #tpu.memory_space<vmem>>, vector<8x32xf32>
      tpu.vector_store %arg23[%c0_88, %c0_89], %136 {strides = array<i32>} : memref<8x32xf32, #tpu.memory_space<vmem>>, vector<8x32xf32>,
    } else {
    }
    %c0 = arith.constant 0 : index
    %c0_1 = arith.constant 0 : index
    %3 = vector.load %arg23[%c0, %c0_1] : memref<8x32xf32, #tpu.memory_space<vmem>>, vector<8x32xf32>
    %4 = arith.truncf %3 : vector<8x32xf32> to vector<8x32xbf16>
    %5 = vector.shape_cast %4 : vector<8x32xbf16> to vector<1x8x32xbf16>
    %6 = vector.shape_cast %5 : vector<1x8x32xbf16> to vector<1x8x32xbf16>
    %7 = vector.broadcast %6 : vector<1x8x32xbf16> to vector<4x8x32xbf16>
    %c0_2 = arith.constant 0 : index
    %c0_3 = arith.constant 0 : index
    %c0_4 = arith.constant 0 : index
    %c0_5 = arith.constant 0 : index
    %8 = vector.load %arg4[%c0_2, %c0_3, %c0_4, %c0_5] : memref<1x4x32x8xbf16, #tpu.memory_space<vmem>>, vector<1x4x32x8xbf16>
    %9 = vector.shape_cast %8 : vector<1x4x32x8xbf16> to vector<4x32x8xbf16>
    "tpu.trace_start"() <{level = 10 : i32, message = "hse,hed->hsd"}> : () -> ()
    %cst = arith.constant dense<0.000000e+00> : vector<4x8x8xf32>
    %10 = tpu.matmul %7, %9, %cst {dimension_numbers = #tpu.dot_dimension_numbers<[2], [1], [1], [2], [0, 0, 0, 1, 1, 2], [0], [0]>} : vector<4x8x32xbf16>, vector<4x32x8xbf16>, vector<4x8x8xf32> -> vector<4x8x8xf32>
    "tpu.trace_stop"() : () -> ()
    %c0_6 = arith.constant 0 : index
    %c0_7 = arith.constant 0 : index
    %c0_8 = arith.constant 0 : index
    %c0_9 = arith.constant 0 : index
    %11 = vector.load %arg5[%c0_6, %c0_7, %c0_8, %c0_9] : memref<1x4x1x8xf32, #tpu.memory_space<vmem>>, vector<1x4x1x8xf32>
    %12 = vector.shape_cast %11 : vector<1x4x1x8xf32> to vector<4x1x8xf32>
    %13 = vector.broadcast %12 : vector<4x1x8xf32> to vector<4x8x8xf32>
    %14 = arith.addf %10, %13 : vector<4x8x8xf32>
    %c0_10 = arith.constant 0 : index
    %c0_11 = arith.constant 0 : index
    %c0_12 = arith.constant 0 : index
    %c0_13 = arith.constant 0 : index
    %15 = vector.load %arg6[%c0_10, %c0_11, %c0_12, %c0_13] : memref<1x4x32x8xbf16, #tpu.memory_space<vmem>>, vector<1x4x32x8xbf16>
    %16 = vector.shape_cast %15 : vector<1x4x32x8xbf16> to vector<4x32x8xbf16>
    "tpu.trace_start"() <{level = 10 : i32, message = "hse,hed->hsd"}> : () -> ()
    %cst_14 = arith.constant dense<0.000000e+00> : vector<4x8x8xf32>
    %17 = tpu.matmul %7, %16, %cst_14 {dimension_numbers = #tpu.dot_dimension_numbers<[2], [1], [1], [2], [0, 0, 0, 1, 1, 2], [0], [0]>} : vector<4x8x32xbf16>, vector<4x32x8xbf16>, vector<4x8x8xf32> -> vector<4x8x8xf32>
    "tpu.trace_stop"() : () -> ()
    %c0_15 = arith.constant 0 : index
    %c0_16 = arith.constant 0 : index
    %c0_17 = arith.constant 0 : index
    %c0_18 = arith.constant 0 : index
    %18 = vector.load %arg7[%c0_15, %c0_16, %c0_17, %c0_18] : memref<1x4x1x8xf32, #tpu.memory_space<vmem>>, vector<1x4x1x8xf32>
    %19 = vector.shape_cast %18 : vector<1x4x1x8xf32> to vector<4x1x8xf32>
    %20 = vector.broadcast %19 : vector<4x1x8xf32> to vector<4x8x8xf32>
    %21 = arith.addf %17, %20 : vector<4x8x8xf32>
    %c0_19 = arith.constant 0 : index
    %c0_20 = arith.constant 0 : index
    %c0_21 = arith.constant 0 : index
    %c0_22 = arith.constant 0 : index
    %22 = vector.load %arg8[%c0_19, %c0_20, %c0_21, %c0_22] : memref<1x4x32x8xbf16, #tpu.memory_space<vmem>>, vector<1x4x32x8xbf16>
    %23 = vector.shape_cast %22 : vector<1x4x32x8xbf16> to vector<4x32x8xbf16>
    "tpu.trace_start"() <{level = 10 : i32, message = "hse,hed->hsd"}> : () -> ()
    %cst_23 = arith.constant dense<0.000000e+00> : vector<4x8x8xf32>
    %24 = tpu.matmul %7, %23, %cst_23 {dimension_numbers = #tpu.dot_dimension_numbers<[2], [1], [1], [2], [0, 0, 0, 1, 1, 2], [0], [0]>} : vector<4x8x32xbf16>, vector<4x32x8xbf16>, vector<4x8x8xf32> -> vector<4x8x8xf32>
    "tpu.trace_stop"() : () -> ()
    %c0_24 = arith.constant 0 : index
    %c0_25 = arith.constant 0 : index
    %c0_26 = arith.constant 0 : index
    %c0_27 = arith.constant 0 : index
    %25 = vector.load %arg9[%c0_24, %c0_25, %c0_26, %c0_27] : memref<1x4x1x8xf32, #tpu.memory_space<vmem>>, vector<1x4x1x8xf32>
    %26 = vector.shape_cast %25 : vector<1x4x1x8xf32> to vector<4x1x8xf32>
    %27 = vector.broadcast %26 : vector<4x1x8xf32> to vector<4x8x8xf32>
    %28 = arith.addf %24, %27 : vector<4x8x8xf32>
    %29 = arith.truncf %14 : vector<4x8x8xf32> to vector<4x8x8xbf16>
    %30 = arith.truncf %21 : vector<4x8x8xf32> to vector<4x8x8xbf16>
    "tpu.trace_start"() <{level = 10 : i32, message = "hqd,hkd->hqk"}> : () -> ()
    %cst_28 = arith.constant dense<0.000000e+00> : vector<4x8x8xf32>
    %31 = tpu.matmul %29, %30, %cst_28 {dimension_numbers = #tpu.dot_dimension_numbers<[2], [2], [1], [1], [0, 0, 0, 1, 1, 1], [0], [0]>} : vector<4x8x8xbf16>, vector<4x8x8xbf16>, vector<4x8x8xf32> -> vector<4x8x8xf32>
    "tpu.trace_stop"() : () -> ()
    %cst_29 = arith.constant 0.353553385 : f32
    %32 = vector.broadcast %cst_29 : f32 to vector<4x8x8xf32>
    %33 = arith.mulf %31, %32 : vector<4x8x8xf32>
    %cst_30 = arith.constant dense<0xFF800000> : vector<4x8xf32>
    %34 = vector.multi_reduction <maximumf>, %33, %cst_30 [2] : vector<4x8x8xf32> to vector<4x8xf32>
    %35 = vector.shape_cast %34 : vector<4x8xf32> to vector<4x8x1xf32>
    %36 = vector.broadcast %35 : vector<4x8x1xf32> to vector<4x8x8xf32>
    %37 = arith.subf %33, %36 : vector<4x8x8xf32>
    %38 = math.exp %37 : vector<4x8x8xf32>
    %cst_31 = arith.constant dense<0.000000e+00> : vector<4x8xf32>
    %39 = vector.multi_reduction <add>, %38, %cst_31 [2] : vector<4x8x8xf32> to vector<4x8xf32>
    %40 = vector.shape_cast %39 : vector<4x8xf32> to vector<4x8x1xf32>
    %41 = tpu.reciprocal %40 {approx = true} : vector<4x8x1xf32> -> vector<4x8x1xf32>
    %42 = vector.broadcast %41 : vector<4x8x1xf32> to vector<4x8x8xf32>
    %43 = arith.mulf %38, %42 : vector<4x8x8xf32>
    %44 = arith.truncf %43 : vector<4x8x8xf32> to vector<4x8x8xbf16>
    %45 = arith.truncf %28 : vector<4x8x8xf32> to vector<4x8x8xbf16>
    "tpu.trace_start"() <{level = 10 : i32, message = "hqk,hkd->hqd"}> : () -> ()
    %cst_32 = arith.constant dense<0.000000e+00> : vector<4x8x8xf32>
    %46 = tpu.matmul %44, %45, %cst_32 {dimension_numbers = #tpu.dot_dimension_numbers<[2], [1], [1], [2], [0, 0, 0, 1, 1, 2], [0], [0]>} : vector<4x8x8xbf16>, vector<4x8x8xbf16>, vector<4x8x8xf32> -> vector<4x8x8xf32>
    "tpu.trace_stop"() : () -> ()
    %47 = arith.truncf %46 : vector<4x8x8xf32> to vector<4x8x8xbf16>
    %c0_33 = arith.constant 0 : index
    %c0_34 = arith.constant 0 : index
    %c0_35 = arith.constant 0 : index
    %c0_36 = arith.constant 0 : index
    %48 = vector.load %arg10[%c0_33, %c0_34, %c0_35, %c0_36] : memref<1x4x8x32xbf16, #tpu.memory_space<vmem>>, vector<1x4x8x32xbf16>
    %49 = vector.shape_cast %48 : vector<1x4x8x32xbf16> to vector<4x8x32xbf16>
    "tpu.trace_start"() <{level = 10 : i32, message = "hqd,hde->hqe"}> : () -> ()
    %cst_37 = arith.constant dense<0.000000e+00> : vector<4x8x32xf32>
    %50 = tpu.matmul %47, %49, %cst_37 {dimension_numbers = #tpu.dot_dimension_numbers<[2], [1], [1], [2], [0, 0, 0, 1, 1, 2], [0], [0]>} : vector<4x8x8xbf16>, vector<4x8x32xbf16>, vector<4x8x32xf32> -> vector<4x8x32xf32>
    "tpu.trace_stop"() : () -> ()
    %cst_38 = arith.constant dense<0.000000e+00> : vector<8x32xf32>
    %51 = vector.multi_reduction <add>, %50, %cst_38 [0] : vector<4x8x32xf32> to vector<8x32xf32>
    %c0_39 = arith.constant 0 : index
    %c0_40 = arith.constant 0 : index
    %c0_41 = arith.constant 0 : index
    %52 = vector.load %arg11[%c0_39, %c0_40, %c0_41] : memref<1x1x32xf32, #tpu.memory_space<vmem>>, vector<1x1x32xf32>
    %53 = vector.shape_cast %52 : vector<1x1x32xf32> to vector<1x32xf32>
    %54 = vector.broadcast %53 : vector<1x32xf32> to vector<8x32xf32>
    %55 = arith.addf %51, %54 : vector<8x32xf32>
    %56 = arith.addf %3, %55 : vector<8x32xf32>
    %c0_42 = arith.constant 0 : index
    %c0_43 = arith.constant 0 : index
    %c0_44 = arith.constant 0 : index
    %57 = vector.load %arg12[%c0_42, %c0_43, %c0_44] : memref<1x1x32xf32, #tpu.memory_space<vmem>>, vector<1x1x32xf32>
    %58 = vector.shape_cast %57 : vector<1x1x32xf32> to vector<1x32xf32>
    %c0_45 = arith.constant 0 : index
    %c0_46 = arith.constant 0 : index
    %c0_47 = arith.constant 0 : index
    %59 = vector.load %arg13[%c0_45, %c0_46, %c0_47] : memref<1x1x32xf32, #tpu.memory_space<vmem>>, vector<1x1x32xf32>
    %60 = vector.shape_cast %59 : vector<1x1x32xf32> to vector<1x32xf32>
    %cst_48 = arith.constant dense<0.000000e+00> : vector<8xf32>
    %61 = vector.multi_reduction <add>, %56, %cst_48 [1] : vector<8x32xf32> to vector<8xf32>
    %62 = vector.shape_cast %61 : vector<8xf32> to vector<8x1xf32>
    %cst_49 = arith.constant 3.200000e+01 : f32
    %63 = vector.broadcast %cst_49 : f32 to vector<8x1xf32>
    %64 = arith.divf %62, %63 : vector<8x1xf32>
    %65 = vector.broadcast %64 : vector<8x1xf32> to vector<8x32xf32>
    %66 = arith.subf %56, %65 : vector<8x32xf32>
    %67 = arith.mulf %66, %66 : vector<8x32xf32>
    %cst_50 = arith.constant dense<0.000000e+00> : vector<8xf32>
    %68 = vector.multi_reduction <add>, %67, %cst_50 [1] : vector<8x32xf32> to vector<8xf32>
    %69 = vector.shape_cast %68 : vector<8xf32> to vector<8x1xf32>
    %cst_51 = arith.constant 3.200000e+01 : f32
    %70 = vector.broadcast %cst_51 : f32 to vector<8x1xf32>
    %71 = arith.divf %69, %70 : vector<8x1xf32>
    %cst_52 = arith.constant 9.99999974E-6 : f32
    %72 = vector.broadcast %cst_52 : f32 to vector<8x1xf32>
    %73 = arith.addf %71, %72 : vector<8x1xf32>
    %74 = math.rsqrt %73 : vector<8x1xf32>
    %75 = vector.broadcast %64 : vector<8x1xf32> to vector<8x32xf32>
    %76 = arith.subf %56, %75 : vector<8x32xf32>
    %77 = vector.broadcast %74 : vector<8x1xf32> to vector<8x32xf32>
    %78 = arith.mulf %76, %77 : vector<8x32xf32>
    %79 = vector.broadcast %58 : vector<1x32xf32> to vector<8x32xf32>
    %80 = arith.mulf %78, %79 : vector<8x32xf32>
    %81 = vector.broadcast %60 : vector<1x32xf32> to vector<8x32xf32>
    %82 = arith.addf %80, %81 : vector<8x32xf32>
    %83 = arith.truncf %82 : vector<8x32xf32> to vector<8x32xbf16>
    %c0_53 = arith.constant 0 : index
    %c0_54 = arith.constant 0 : index
    %c0_55 = arith.constant 0 : index
    %84 = vector.load %arg16[%c0_53, %c0_54, %c0_55] : memref<1x32x128xbf16, #tpu.memory_space<vmem>>, vector<1x32x128xbf16>
    %85 = vector.shape_cast %84 : vector<1x32x128xbf16> to vector<32x128xbf16>
    %cst_56 = arith.constant dense<0.000000e+00> : vector<8x128xf32>
    %86 = tpu.matmul %83, %85, %cst_56 {dimension_numbers = #tpu.dot_dimension_numbers<[1], [0], [0], [1], [0, 0, 1, 1], [], []>} : vector<8x32xbf16>, vector<32x128xbf16>, vector<8x128xf32> -> vector<8x128xf32>
    %c0_57 = arith.constant 0 : index
    %c0_58 = arith.constant 0 : index
    %c0_59 = arith.constant 0 : index
    %87 = vector.load %arg17[%c0_57, %c0_58, %c0_59] : memref<1x1x128xf32, #tpu.memory_space<vmem>>, vector<1x1x128xf32>
    %88 = vector.shape_cast %87 : vector<1x1x128xf32> to vector<1x128xf32>
    %89 = vector.broadcast %88 : vector<1x128xf32> to vector<8x128xf32>
    %90 = arith.addf %86, %89 : vector<8x128xf32>
    %cst_60 = arith.constant 0.000000e+00 : f32
    %91 = vector.broadcast %cst_60 : f32 to vector<8x128xf32>
    %92 = arith.maximumf %90, %91 : vector<8x128xf32>
    %93 = arith.truncf %92 : vector<8x128xf32> to vector<8x128xbf16>
    %c0_61 = arith.constant 0 : index
    %c0_62 = arith.constant 0 : index
    %c0_63 = arith.constant 0 : index
    %94 = vector.load %arg18[%c0_61, %c0_62, %c0_63] : memref<1x128x32xbf16, #tpu.memory_space<vmem>>, vector<1x128x32xbf16>
    %95 = vector.shape_cast %94 : vector<1x128x32xbf16> to vector<128x32xbf16>
    %cst_64 = arith.constant dense<0.000000e+00> : vector<8x32xf32>
    %96 = tpu.matmul %93, %95, %cst_64 {dimension_numbers = #tpu.dot_dimension_numbers<[1], [0], [0], [1], [0, 0, 1, 1], [], []>} : vector<8x128xbf16>, vector<128x32xbf16>, vector<8x32xf32> -> vector<8x32xf32>
    %c0_65 = arith.constant 0 : index
    %c0_66 = arith.constant 0 : index
    %c0_67 = arith.constant 0 : index
    %97 = vector.load %arg19[%c0_65, %c0_66, %c0_67] : memref<1x1x32xf32, #tpu.memory_space<vmem>>, vector<1x1x32xf32>
    %98 = vector.shape_cast %97 : vector<1x1x32xf32> to vector<1x32xf32>
    %99 = vector.broadcast %98 : vector<1x32xf32> to vector<8x32xf32>
    %100 = arith.addf %96, %99 : vector<8x32xf32>
    %101 = arith.addf %82, %100 : vector<8x32xf32>
    %c0_68 = arith.constant 0 : index
    %c0_69 = arith.constant 0 : index
    %c0_70 = arith.constant 0 : index
    %102 = vector.load %arg14[%c0_68, %c0_69, %c0_70] : memref<1x1x32xf32, #tpu.memory_space<vmem>>, vector<1x1x32xf32>
    %103 = vector.shape_cast %102 : vector<1x1x32xf32> to vector<1x32xf32>
    %c0_71 = arith.constant 0 : index
    %c0_72 = arith.constant 0 : index
    %c0_73 = arith.constant 0 : index
    %104 = vector.load %arg15[%c0_71, %c0_72, %c0_73] : memref<1x1x32xf32, #tpu.memory_space<vmem>>, vector<1x1x32xf32>
    %105 = vector.shape_cast %104 : vector<1x1x32xf32> to vector<1x32xf32>
    %cst_74 = arith.constant dense<0.000000e+00> : vector<8xf32>
    %106 = vector.multi_reduction <add>, %101, %cst_74 [1] : vector<8x32xf32> to vector<8xf32>
    %107 = vector.shape_cast %106 : vector<8xf32> to vector<8x1xf32>
    %cst_75 = arith.constant 3.200000e+01 : f32
    %108 = vector.broadcast %cst_75 : f32 to vector<8x1xf32>
    %109 = arith.divf %107, %108 : vector<8x1xf32>
    %110 = vector.broadcast %109 : vector<8x1xf32> to vector<8x32xf32>
    %111 = arith.subf %101, %110 : vector<8x32xf32>
    %112 = arith.mulf %111, %111 : vector<8x32xf32>
    %cst_76 = arith.constant dense<0.000000e+00> : vector<8xf32>
    %113 = vector.multi_reduction <add>, %112, %cst_76 [1] : vector<8x32xf32> to vector<8xf32>
    %114 = vector.shape_cast %113 : vector<8xf32> to vector<8x1xf32>
    %cst_77 = arith.constant 3.200000e+01 : f32
    %115 = vector.broadcast %cst_77 : f32 to vector<8x1xf32>
    %116 = arith.divf %114, %115 : vector<8x1xf32>
    %cst_78 = arith.constant 9.99999974E-6 : f32
    %117 = vector.broadcast %cst_78 : f32 to vector<8x1xf32>
    %118 = arith.addf %116, %117 : vector<8x1xf32>
    %119 = math.rsqrt %118 : vector<8x1xf32>
    %120 = vector.broadcast %109 : vector<8x1xf32> to vector<8x32xf32>
    %121 = arith.subf %101, %120 : vector<8x32xf32>
    %122 = vector.broadcast %119 : vector<8x1xf32> to vector<8x32xf32>
    %123 = arith.mulf %121, %122 : vector<8x32xf32>
    %124 = vector.broadcast %103 : vector<1x32xf32> to vector<8x32xf32>
    %125 = arith.mulf %123, %124 : vector<8x32xf32>
    %126 = vector.broadcast %105 : vector<1x32xf32> to vector<8x32xf32>
    %127 = arith.addf %125, %126 : vector<8x32xf32>
    %c0_79 = arith.constant 0 : index
    %c0_80 = arith.constant 0 : index
    %128 = vector.load %arg23[%c0_79, %c0_80] : memref<8x32xf32, #tpu.memory_space<vmem>>, vector<8x32xf32>
    tpu.vector_store %arg23[%c0_79, %c0_80], %127 {strides = array<i32>} : memref<8x32xf32, #tpu.memory_space<vmem>>, vector<8x32xf32>,
    %c1_i32 = arith.constant 1 : i32
    %129 = arith.cmpi eq, %arg1, %c1_i32 : i32
    %130 = arith.extui %129 : i1 to i32
    %c0_i32_81 = arith.constant 0 : i32
    %131 = arith.cmpi ne, %130, %c0_i32_81 : i32
    scf.if %131 {
      %132 = arith.truncf %127 : vector<8x32xf32> to vector<8x32xbf16>
      %c0_82 = arith.constant 0 : index
      %c0_83 = arith.constant 0 : index
      %133 = vector.load %arg20[%c0_82, %c0_83] : memref<32x128xbf16, #tpu.memory_space<vmem>>, vector<32x128xbf16>
      %cst_84 = arith.constant dense<0.000000e+00> : vector<8x128xf32>
      %134 = tpu.matmul %132, %133, %cst_84 {dimension_numbers = #tpu.dot_dimension_numbers<[1], [0], [0], [1], [0, 0, 1, 1], [], []>} : vector<8x32xbf16>, vector<32x128xbf16>, vector<8x128xf32> -> vector<8x128xf32>
      %c0_85 = arith.constant 0 : index
      %c0_86 = arith.constant 0 : index
      %135 = vector.load %arg21[%c0_85, %c0_86] : memref<1x128xf32, #tpu.memory_space<vmem>>, vector<1x128xf32>
      %136 = vector.broadcast %135 : vector<1x128xf32> to vector<8x128xf32>
      %137 = arith.addf %134, %136 : vector<8x128xf32>
      %cst_87 = arith.constant dense<0xFF800000> : vector<8xf32>
      %138 = vector.multi_reduction <maximumf>, %137, %cst_87 [1] : vector<8x128xf32> to vector<8xf32>
      %139 = vector.shape_cast %138 : vector<8xf32> to vector<8x1xf32>
      %140 = vector.broadcast %139 : vector<8x1xf32> to vector<8x128xf32>
      %141 = arith.subf %137, %140 : vector<8x128xf32>
      %142 = math.exp %141 : vector<8x128xf32>
      %cst_88 = arith.constant dense<0.000000e+00> : vector<8xf32>
      %143 = vector.multi_reduction <add>, %142, %cst_88 [1] : vector<8x128xf32> to vector<8xf32>
      %144 = vector.shape_cast %143 : vector<8xf32> to vector<8x1xf32>
      %145 = math.log %144 : vector<8x1xf32>
      %146 = vector.broadcast %145 : vector<8x1xf32> to vector<8x128xf32>
      %147 = arith.subf %141, %146 : vector<8x128xf32>
      %c0_89 = arith.constant 0 : index
      %c0_90 = arith.constant 0 : index
      %c0_91 = arith.constant 0 : index
      %148 = vector.load %arg22[%c0_89, %c0_90, %c0_91] : memref<1x8x128xf32, #tpu.memory_space<vmem>>, vector<1x8x128xf32>
      %149 = vector.shape_cast %148 : vector<1x8x128xf32> to vector<8x128xf32>
      %150 = vector.shape_cast %147 : vector<8x128xf32> to vector<1x8x128xf32>
      tpu.vector_store %arg22[%c0_89, %c0_90, %c0_91], %150 {strides = array<i32>} : memref<1x8x128xf32, #tpu.memory_space<vmem>>, vector<1x8x128xf32>,
    } else {
    }
    return
  }
  func.func @transform_0(%arg0: i32, %arg1: i32) -> (i32, i32, i32) {
    %c0_i32 = arith.constant 0 : i32
    %c0_i32_0 = arith.constant 0 : i32
    %c0_i32_1 = arith.constant 0 : i32
    return %arg0, %c0_i32, %c0_i32_0 : i32, i32, i32
  }
  func.func @transform_1(%arg0: i32, %arg1: i32) -> (i32, i32, i32) {
    %c0_i32 = arith.constant 0 : i32
    %c0_i32_0 = arith.constant 0 : i32
    %c0_i32_1 = arith.constant 0 : i32
    %c0_i32_2 = arith.constant 0 : i32
    return %c0_i32, %c0_i32_0, %c0_i32_1 : i32, i32, i32
  }
  func.func @transform_2(%arg0: i32, %arg1: i32) -> (i32, i32, i32, i32) {
    %c0_i32 = arith.constant 0 : i32
    %c0_i32_0 = arith.constant 0 : i32
    %c0_i32_1 = arith.constant 0 : i32
    %c0_i32_2 = arith.constant 0 : i32
    return %arg1, %c0_i32, %c0_i32_0, %c0_i32_1 : i32, i32, i32, i32
  }
  func.func @transform_3(%arg0: i32, %arg1: i32) -> (i32, i32, i32, i32) {
    %c0_i32 = arith.constant 0 : i32
    %c0_i32_0 = arith.constant 0 : i32
    %c0_i32_1 = arith.constant 0 : i32
    %c0_i32_2 = arith.constant 0 : i32
    return %arg1, %c0_i32, %c0_i32_0, %c0_i32_1 : i32, i32, i32, i32
  }
  func.func @transform_4(%arg0: i32, %arg1: i32) -> (i32, i32, i32, i32) {
    %c0_i32 = arith.constant 0 : i32
    %c0_i32_0 = arith.constant 0 : i32
    %c0_i32_1 = arith.constant 0 : i32
    %c0_i32_2 = arith.constant 0 : i32
    return %arg1, %c0_i32, %c0_i32_0, %c0_i32_1 : i32, i32, i32, i32
  }
  func.func @transform_5(%arg0: i32, %arg1: i32) -> (i32, i32, i32, i32) {
    %c0_i32 = arith.constant 0 : i32
    %c0_i32_0 = arith.constant 0 : i32
    %c0_i32_1 = arith.constant 0 : i32
    %c0_i32_2 = arith.constant 0 : i32
    return %arg1, %c0_i32, %c0_i32_0, %c0_i32_1 : i32, i32, i32, i32
  }
  func.func @transform_6(%arg0: i32, %arg1: i32) -> (i32, i32, i32, i32) {
    %c0_i32 = arith.constant 0 : i32
    %c0_i32_0 = arith.constant 0 : i32
    %c0_i32_1 = arith.constant 0 : i32
    %c0_i32_2 = arith.constant 0 : i32
    return %arg1, %c0_i32, %c0_i32_0, %c0_i32_1 : i32, i32, i32, i32
  }
  func.func @transform_7(%arg0: i32, %arg1: i32) -> (i32, i32, i32, i32) {
    %c0_i32 = arith.constant 0 : i32
    %c0_i32_0 = arith.constant 0 : i32
    %c0_i32_1 = arith.constant 0 : i32
    %c0_i32_2 = arith.constant 0 : i32
    return %arg1, %c0_i32, %c0_i32_0, %c0_i32_1 : i32, i32, i32, i32
  }
  func.func @transform_8(%arg0: i32, %arg1: i32) -> (i32, i32, i32, i32) {
    %c0_i32 = arith.constant 0 : i32
    %c0_i32_0 = arith.constant 0 : i32
    %c0_i32_1 = arith.constant 0 : i32
    %c0_i32_2 = arith.constant 0 : i32
    return %arg1, %c0_i32, %c0_i32_0, %c0_i32_1 : i32, i32, i32, i32
  }
  func.func @transform_9(%arg0: i32, %arg1: i32) -> (i32, i32, i32) {
    %c0_i32 = arith.constant 0 : i32
    %c0_i32_0 = arith.constant 0 : i32
    %c0_i32_1 = arith.constant 0 : i32
    return %arg1, %c0_i32, %c0_i32_0 : i32, i32, i32
  }
  func.func @transform_10(%arg0: i32, %arg1: i32) -> (i32, i32, i32) {
    %c0_i32 = arith.constant 0 : i32
    %c0_i32_0 = arith.constant 0 : i32
    %c0_i32_1 = arith.constant 0 : i32
    return %arg1, %c0_i32, %c0_i32_0 : i32, i32, i32
  }
  func.func @transform_11(%arg0: i32, %arg1: i32) -> (i32, i32, i32) {
    %c0_i32 = arith.constant 0 : i32
    %c0_i32_0 = arith.constant 0 : i32
    %c0_i32_1 = arith.constant 0 : i32
    return %arg1, %c0_i32, %c0_i32_0 : i32, i32, i32
  }
  func.func @transform_12(%arg0: i32, %arg1: i32) -> (i32, i32, i32) {
    %c0_i32 = arith.constant 0 : i32
    %c0_i32_0 = arith.constant 0 : i32
    %c0_i32_1 = arith.constant 0 : i32
    return %arg1, %c0_i32, %c0_i32_0 : i32, i32, i32
  }
  func.func @transform_13(%arg0: i32, %arg1: i32) -> (i32, i32, i32) {
    %c0_i32 = arith.constant 0 : i32
    %c0_i32_0 = arith.constant 0 : i32
    %c0_i32_1 = arith.constant 0 : i32
    return %arg1, %c0_i32, %c0_i32_0 : i32, i32, i32
  }
  func.func @transform_14(%arg0: i32, %arg1: i32) -> (i32, i32, i32) {
    %c0_i32 = arith.constant 0 : i32
    %c0_i32_0 = arith.constant 0 : i32
    %c0_i32_1 = arith.constant 0 : i32
    return %arg1, %c0_i32, %c0_i32_0 : i32, i32, i32
  }
  func.func @transform_15(%arg0: i32, %arg1: i32) -> (i32, i32, i32) {
    %c0_i32 = arith.constant 0 : i32
    %c0_i32_0 = arith.constant 0 : i32
    %c0_i32_1 = arith.constant 0 : i32
    return %arg1, %c0_i32, %c0_i32_0 : i32, i32, i32
  }
  func.func @transform_16(%arg0: i32, %arg1: i32) -> (i32, i32, i32) {
    %c0_i32 = arith.constant 0 : i32
    %c0_i32_0 = arith.constant 0 : i32
    %c0_i32_1 = arith.constant 0 : i32
    return %arg1, %c0_i32, %c0_i32_0 : i32, i32, i32
  }
  func.func @transform_17(%arg0: i32, %arg1: i32) -> (i32, i32, i32) {
    %c0_i32 = arith.constant 0 : i32
    %c0_i32_0 = arith.constant 0 : i32
    %c0_i32_1 = arith.constant 0 : i32
    return %arg1, %c0_i32, %c0_i32_0 : i32, i32, i32
  }
  func.func @transform_18(%arg0: i32, %arg1: i32) -> (i32, i32) {
    %c0_i32 = arith.constant 0 : i32
    %c0_i32_0 = arith.constant 0 : i32
    %c0_i32_1 = arith.constant 0 : i32
    return %c0_i32, %c0_i32_0 : i32, i32
  }
  func.func @transform_19(%arg0: i32, %arg1: i32) -> (i32, i32) {
    %c0_i32 = arith.constant 0 : i32
    %c0_i32_0 = arith.constant 0 : i32
    %c0_i32_1 = arith.constant 0 : i32
    return %c0_i32, %c0_i32_0 : i32, i32
  }
  func.func @transform_20(%arg0: i32, %arg1: i32) -> (i32, i32, i32) {
    %c0_i32 = arith.constant 0 : i32
    %c0_i32_0 = arith.constant 0 : i32
    %c0_i32_1 = arith.constant 0 : i32
    return %arg0, %c0_i32, %c0_i32_0 : i32, i32, i32
  }
}

</mosaic_0001>

<bundles_post_ra>
// kernel: ctc_decoder_forward.1
= control target key start
LH: loop header
LB: loop body
LE: loop exit
PB: predicated region body
PF: predicated region fallthrough
CT: control target
= control target key end

     0   :  { %s4060_s0 = inlined_call_operand.hbm [shape: f32[2,8,32], index: 0, kind: input, shape index: {}]   ;;  %s4061_s1 = inlined_call_operand.hbm [shape: f32[1,8,32], index: 1, kind: input, shape index: {}]   ;;  %s4062_s2 = inlined_call_operand.hbm [shape: bf16[2,4,32,8], index: 2, kind: input, shape index: {}]   ;;  %s4063_s3 = inlined_call_operand.hbm [shape: f32[2,4,1,8], index: 3, kind: input, shape index: {}]   ;;  %s4064_s4 = inlined_call_operand.hbm [shape: bf16[2,4,32,8], index: 4, kind: input, shape index: {}]   ;;  %s4065_s5 = inlined_call_operand.hbm [shape: f32[2,4,1,8], index: 5, kind: input, shape index: {}]   ;;  %s4066_s6 = inlined_call_operand.hbm [shape: bf16[2,4,32,8], index: 6, kind: input, shape index: {}]   ;;  %s4067_s7 = inlined_call_operand.hbm [shape: f32[2,4,1,8], index: 7, kind: input, shape index: {}]   ;;  %s4068_s8 = inlined_call_operand.hbm [shape: bf16[2,4,8,32], index: 8, kind: input, shape index: {}]   ;;  %s4069_s9 = inlined_call_operand.hbm [shape: f32[2,1,32], index: 9, kind: input, shape index: {}]   ;;  %s4070_s10 = inlined_call_operand.vmem [shape: f32[2,1,32], index: 10, kind: input, shape index: {}, may-alias: {10,12}]   ;;  %s4071_s11 = inlined_call_operand.vmem [shape: f32[2,1,32], index: 11, kind: input, shape index: {}, may-alias: {11,13}]   ;;  %s4072_s12 = inlined_call_operand.vmem [shape: f32[2,1,32], index: 12, kind: input, shape index: {}, may-alias: {10,12}]   ;;  %s4073_s13 = inlined_call_operand.vmem [shape: f32[2,1,32], index: 13, kind: input, shape index: {}, may-alias: {11,13}]   ;;  %s4074_s14 = inlined_call_operand.hbm [shape: bf16[2,32,128], index: 14, kind: input, shape index: {}]   ;;  %s4075_s15 = inlined_call_operand.vmem [shape: f32[2,1,128], index: 15, kind: input, shape index: {}]   ;;  %s4076_s16 = inlined_call_operand.hbm [shape: bf16[2,128,32], index: 16, kind: input, shape index: {}]   ;;  %s4077_s17 = inlined_call_operand.vmem [shape: f32[2,1,32], index: 17, kind: input, shape index: {}]   ;;  %s4078_s18 = inlined_call_operand.vmem [shape: bf16[32,128], index: 18, kind: input, shape index: {}]   ;;  %s4079_s19 = inlined_call_operand.vmem [shape: f32[1,128], index: 19, kind: input, shape index: {}]   ;;  %s4080_s20 = inlined_call_operand.hbm [shape: f32[2,8,128], index: 20, kind: output, shape index: {}]  }
   0x1   :  { %4110 = sst [smem:[#allocation40_spill]] %s4060_s0 }
   0x2   :  { %4111 = sst [smem:[#allocation41_spill]] %s4061_s1 }
   0x3   :  { %4112 = sst [smem:[#allocation42_spill]] %s4062_s2 }
   0x4   :  { %4113 = sst [smem:[#allocation43_spill]] %s4063_s3 }
   0x5   :  { %4114 = sst [smem:[#allocation44_spill]] %s4064_s4 }
   0x6   :  { %4115 = sst [smem:[#allocation45_spill]] %s4065_s5 }
   0x7   :  { %4116 = sst [smem:[#allocation46_spill]] %s4066_s6 }
   0x8   :  { %4117 = sst [smem:[#allocation47_spill]] %s4067_s7 }
   0x9   :  { %4118 = sst [smem:[#allocation48_spill]] %s4068_s8 }
   0xa   :  { %4119 = sst [smem:[#allocation49_spill]] %s4069_s9 }
   0xb   :  { %4120 = sst [smem:[#allocation50_spill]] %s4070_s10 }
   0xc   :  { %4121 = sst [smem:[#allocation51_spill]] %s4071_s11 }
   0xd   :  { %4122 = sst [smem:[#allocation52_spill]] %s4072_s12 }
   0xe   :  { %4123 = sst [smem:[#allocation53_spill]] %s4073_s13 }
   0xf   :  { %4124 = sst [smem:[#allocation54_spill]] %s4074_s14 }
  0x10   :  { %4125 = sst [smem:[#allocation55_spill]] %s4075_s15 }
  0x11   :  { %4126 = sst [smem:[#allocation56_spill]] %s4077_s17 }
  0x12   :  { %4127 = sst [smem:[#allocation57_spill]] %s4078_s18 }
  0x13   :  { %4128 = sst [smem:[#allocation58_spill]] %s4079_s19 }
  0x14   :  { %4129 = sst [smem:[#allocation59_spill]] %s4080_s20 }
  0x15   :  { %25 = vsyncpa [#allocation4], 0 }
  0x16   :  { %27 = vsyncpa [#allocation4 + $0x1], 0 }
  0x17   :  { %28 = vsyncpa [#allocation7], 0 }
  0x18   :  { %29 = vsyncpa [#allocation5], 0 }
  0x19   :  { %31 = vsyncpa [#allocation5 + $0x1], 0  ;;  %s3489_s1 = smov 0   ;;  %s3491_s22 = smov 0  }
  0x1a   :  { %s3493_s23 = smov 0   ;;  %s3495_s24 = smov 0  }
  0x1b   :  { %s3497_s2 = smov 0   ;;  %s3499_s25 = smov 0  }
  0x1c   :  { %s3501_s3 = smov 0   ;;  %s3503_s26 = smov 0  }
  0x1d   :  { %s3505_s27 = smov 0   ;;  %s3507_s28 = smov 0  }
  0x1e   :  { %s3509_s4 = smov 0  }
  0x1f LB: > { %4130 = sst [smem:[#allocation23_spill]] %s3340_s22  ;;  %s3545_s29 = sadd.s32 4294967295, %s3376_s4   ;;  %s3376_s4 = sphi %s3509_s4, %s37_s4   ;;  %s3372_s28 = sphi %s3507_s28, %s4209_s28   ;;  %s3368_s27 = sphi %s3505_s27, %s4211_s27   ;;  %s3364_s26 = sphi %s3503_s26, %s4207_s26   ;;  %s3360_s3 = sphi %s3501_s3, %s4210_s3   ;;  %s3356_s25 = sphi %s3499_s25, %s4206_s25   ;;  %s3352_s2 = sphi %s3497_s2, %s4205_s2   ;;  %s3348_s24 = sphi %s3495_s24, %s4204_s24   ;;  %s3344_s23 = sphi %s3493_s23, %s4203_s23   ;;  %s3340_s22 = sphi %s3491_s22, %s4202_s22   ;;  %s3336_s1 = sphi %s3489_s1, %s4201_s1  }
  0x20   : > { %4131 = sst [smem:[#allocation24_spill]] %s3344_s23  ;;  %s2468_s30 = sadd.s32 4294967294, %s3376_s4  }
  0x21   : > { %4132 = sst [smem:[#allocation25_spill]] %s3348_s24  ;;  %s46_s0 = sadd.s32 1, %s3368_s27 }
  0x22   : > { %4133 = sst [smem:[#allocation26_spill]] %s3352_s2  ;;  %s49_s21 = sadd.s32 1, %s3372_s28 }
  0x23   : > { %4134 = sst [smem:[#allocation27_spill]] %s3356_s25  ;;  %p47_p0 = scmp.ge.s32.totalorder %s46_s0, 2 }
  0x24   : > { %4135 = sst [smem:[#allocation28_spill]] %s3360_s3  ;;  %s56_s20 = sadd.s32 1, %s3356_s25 }
  0x25   : > { %4136 = sst [smem:[#allocation29_spill]] %s3364_s26  ;;  %p4085_p1 = scmp.ne.s32.totalorder %s3356_s25, %s3352_s2 }
  0x26   : > { %4137 = sst [smem:[#allocation30_spill]] %s3372_s28  ;;  %p64_p2 = scmp.eq.s32.totalorder %s3376_s4, 0 }
  0x27   : > { %4138 = sst [smem:[#allocation31_spill]] %s3376_s4  ;;  %s4213_s0 = smov (%p47_p0, %s46_s0), 0 }
  0x28   : > { %4139 = sst [smem:[#allocation32_spill]] %s4213_s0  ;;  %s4215_s21 = smov (!%p47_p0, %s49_s21), %s3372_s28 }
  0x29   : > { %p3562_p3 = por %p64_p2, %p4085_p1  ;;  %p4084_p4 = scmp.ne.s32.totalorder %s3352_s2, %s3348_s24 }
  0x2a   : > { %p51_p5 = scmp.ge.s32.totalorder %s4215_s21, 2  ;;  %p70_p6 = scmp.eq.s32.totalorder %s3545_s29, 0 }
  0x2b   : > { %s4140_s26 = scalar_select %p3562_p3, 1, 0 }
  0x2c   : > { %s100_s19 = ssub.s32 %s3368_s27, %s4213_s0  ;;  %s103_s18 = sadd.s32 1, %s3344_s23 }
  0x2d   : > { %s4217_s21 = smov (%p51_p5, %s4215_s21), 0  ;;  %p3579_p7 = por %p70_p6, %p4084_p4 }
  0x2e   : > { %4141 = sst [smem:[#allocation33_spill]] %s4217_s21  ;;  %p101_p8 = scmp.eq.s32.totalorder %s100_s19, 0 }
  0x2f   : > { %s4142_s17 = scalar_select %p3579_p7, 1, 0 }
  0x30   : > { %s53_s15 = ssub.s32 %s3372_s28, %s4217_s21  ;;  %p110_p9 = scmp.ne.s32.totalorder %s3344_s23, %s3340_s22 }
  0x31   : > { %4143 = sst [smem:[#allocation34_spill]] %s4142_s17  ;;  %p54_p10 = scmp.eq.s32.totalorder %s53_s15, 0 }
  0x32   : > { %p116_p11 = scmp.ne.s32.totalorder %s3340_s22, %s3336_s1  ;;  %p3597_p12 = por %p110_p9, %p64_p2 }
  0x33   : > { %s3590_s0 = scalar_select %p101_p8, %s3344_s23, %s103_s18  }
  0x34   : > { %s3593_s13 = scalar_select %p54_p10, %s3356_s25, %s56_s20  }
  0x35   : > { %4144 = sst [smem:[#allocation35_spill]] %s3590_s0  ;;  %p3603_p13 = por %p116_p11, %p70_p6 }
  0x36   : > { %4145 = sst [smem:[#allocation36_spill]] %s3593_s13  ;;  %p572_p0 = scmp.eq.s32.totalorder %s3545_s29, 3 }
  0x37   : > { %s4147_s11 = scalar_select %p3603_p13, 1, 0 }
  0x38   : > { %p578_p5 = scmp.eq.s32.totalorder %s2468_s30, 3  ;;  %p2469_p4 = scmp.ge.s32.totalorder %s3376_s4, 1 }
  0x39   : > { %4148 = sst [smem:[#allocation37_spill]] %s4147_s11  ;;  %p585_p1 = scmp.lt.s32.totalorder %s3376_s4, 5 }
  0x3a   : > { %p4149_p7 = scmp.ne.s32.totalorder %s3356_s25, %s3352_s2  ;;  %p4152_p10 = scmp.ne.s32.totalorder %s3352_s2, %s3348_s24 }
  0x3b   : > { %p3624_p2 = pnand %p2469_p4, %p585_p1  ;;  %s4156_s21 = sld [smem:[#allocation41_spill]] }
  0x3c   : > { %p3613_p8 = por %p572_p0, %p4149_p7  ;;  %p3620_p3 = por %p578_p5, %p4152_p10 }
  0x3d   : > { %p2757_p9 = pneg %p3624_p2  ;;  %s3378_s13 = smov [#allocation6]  }
  0x3e   : > { %s4150_s15 = scalar_select %p3613_p8, 1, 0 }
  0x3f   : > { %s4153_s18 = scalar_select %p3620_p3, 1, 0 }
  0x40   : > { %4151 = sst [smem:[#allocation38_spill]] %s4150_s15  ;;  %s599_s0 = sshll.u32 %s3378_s13, 4  ;;  %s600_s0 = int_to_ptr.vmem [resolvable:$true] %s599_s0 }
  0x41   : > { %4154 = sst [smem:[#allocation39_spill]] %s4153_s18  ;;  %s597_s30 = sshll.u32 %s4156_s21, 4  ;;  %s598_s30 = int_to_ptr.hbm [resolvable:$true] %s597_s30 }
  0x42   : > { %p2758_p7 = pnand %p2757_p9, %p70_p6  ;;  %p2471_p11 = scmp.ge.s32.totalorder %s3376_s4, 4 }
  0x43   : > { %s616_s20 = sand.u32 (!%p2471_p11), 1, %s3376_s4   ;;  %s618_s21 = sand.u32 (!%p2471_p11), 1, %s3356_s25  }
  0x44   : > { %2760 = dma.hbm_to_vmem [thread:$0]  (!%p2758_p7), %s598_s30, 128, %s600_s0, [#allocation7]  }
  0x45   : > { %612 = sbr.rel (%p2471_p11) target bundleno = 120 (0x78), region = 28  ;;  %s2472_s1 = sshll.u32 (!%p2471_p11), %s618_s21, 3 }
  0x46   : > { %s2473_s18 = sshll.u32 (!%p2471_p11), %s3372_s28, 3  ;;  %s4157_s13 = sld [smem:[#allocation40_spill]] (!%p2471_p11) }
  0x47   : > { %s620_s3 = scalar_lea.vmem (!%p2471_p11), [#allocation3], %s2472_s1  ;;  %s3643_s30 = sand.u32 (!%p2471_p11), 1, %s3344_s23  }
  0x48   : > { %s628_s11 = sshll.u32 (!%p2471_p11), %s620_s3, 4  ;;  %s3645_s22 = scalar_lea.sflag (!%p2471_p11), [#allocation4], %s616_s20  ;;  %s629_s11 = int_to_ptr.vmem [resolvable:$true] %s628_s11 }
  0x49   : > { %p4158_p1 = scmp.ne.s32.totalorder (!%p2471_p11), %s4140_s26, 0  ;;  %s3651_s21 = sshll.u32 (!%p2471_p11), %s3643_s30, 6 }
  0x4a   : > { %s3654_s24 = sshll.u32 %s3368_s27, 6  ;;  %s4159_s15 = sld [smem:[#allocation42_spill]] }
  0x4b   : > { %s4099_s26 = smov 64   ;;  %s3668_s20 = sshll.u32 %s3643_s30, 2 }
  0x4c   : > { %s624_s10 = scalar_lea.hbm %s4157_s13, %s2473_s18  ;;  %s639_s13 = scalar_lea.vmem [#allocation8], %s3651_s21 }
  0x4d   : > { %s626_s0 = sshll.u32 %s624_s10, 4  ;;  %s647_s28 = sshll.u32 %s639_s13, 4  ;;  %s627_s0 = int_to_ptr.hbm [resolvable:$true] %s626_s0  ;;  %s648_s28 = int_to_ptr.vmem [resolvable:$true] %s647_s28 }
  0x4e   : > { %2731 = dma.hbm_to_vmem [thread:$0]  (%p4158_p1), %s627_s0, 128, %s629_s11, %s3645_s22  }
  0x4f   : > { %s4101_s11 = smov 4   ;;  %s3671_s0 = sshll.u32 %s3368_s27, 2 }
  0x50   : > { %s644_s18 = scalar_lea.hbm %s4159_s15, %s3654_s24  ;;  %s4160_s15 = sld [smem:[#allocation43_spill]] }
  0x51   : > { %s645_s1 = sshll.u32 %s644_s18, 4  ;;  %s661_s25 = scalar_lea.vmem [#allocation9], %s3668_s20  ;;  %s646_s1 = int_to_ptr.hbm [resolvable:$true] %s645_s1 }
  0x52   : > { %2732 = dma.hbm_to_vmem [thread:$0]  (%p3597_p12), %s646_s1, 1024, %s648_s28, %s3645_s22, %s4099_s26, %s4099_s26, %s4101_s11  }
  0x53   : > { %s668_s23 = sshll.u32 %s661_s25, 4  ;;  %s3381_s28 = smov 16   ;;  %s669_s23 = int_to_ptr.vmem [resolvable:$true] %s668_s23 }
  0x54   : > { %s3382_s1 = smov 1   ;;  %s682_s11 = scalar_lea.vmem [#allocation10], %s3651_s21 }
  0x55   : > { %s690_s25 = sshll.u32 %s682_s11, 4  ;;  %s4162_s4 = smov 4   ;;  %s691_s25 = int_to_ptr.vmem [resolvable:$true] %s690_s25 }
  0x56   : > { %s665_s18 = scalar_lea.hbm %s4160_s15, %s3671_s0  ;;  %s4161_s15 = sld [smem:[#allocation44_spill]] }
  0x57   : > { %s666_s13 = sshll.u32 %s665_s18, 4  ;;  %s4163_s17 = smov 64   ;;  %s667_s13 = int_to_ptr.hbm [resolvable:$true] %s666_s13 }
  0x58   : > { %2733 = dma.hbm_to_vmem [thread:$0]  (%p3597_p12), %s667_s13, 64, %s669_s23, %s3645_s22, %s3381_s28, %s3381_s28, %s3382_s1  }
  0x59   : > { %s4164_s5 = sld [smem:[#allocation45_spill]]  ;;  %s704_s3 = scalar_lea.vmem [#allocation11], %s3668_s20 }
  0x5a   : > { %s4165_s6 = sld [smem:[#allocation46_spill]]  ;;  %s747_s11 = scalar_lea.vmem [#allocation13], %s3668_s20 }
  0x5b   : > { %s4166_s7 = sld [smem:[#allocation47_spill]] }
  0x5c   : > { %s687_s26 = scalar_lea.hbm %s4161_s15, %s3654_s24  ;;  %s754_s15 = sshll.u32 %s747_s11, 4  ;;  %s755_s15 = int_to_ptr.vmem [resolvable:$true] %s754_s15 }
  0x5d   : > { %s688_s18 = sshll.u32 %s687_s26, 4  ;;  %s711_s26 = sshll.u32 %s704_s3, 4  ;;  %s689_s18 = int_to_ptr.hbm [resolvable:$true] %s688_s18  ;;  %s712_s26 = int_to_ptr.vmem [resolvable:$true] %s711_s26 }
  0x5e   : > { %2734 = dma.hbm_to_vmem [thread:$0]  (%p3597_p12), %s689_s18, 1024, %s691_s25, %s3645_s22, %s4163_s17, %s4163_s17, %s4162_s4  }
  0x5f   : > { %s708_s13 = scalar_lea.hbm %s4164_s5, %s3671_s0  ;;  %s725_s25 = scalar_lea.vmem [#allocation12], %s3651_s21 }
  0x60   : > { %s709_s10 = sshll.u32 %s708_s13, 4  ;;  %s730_s2 = scalar_lea.hbm %s4165_s6, %s3654_s24  ;;  %s710_s10 = int_to_ptr.hbm [resolvable:$true] %s709_s10 }
  0x61   : > { %2735 = dma.hbm_to_vmem [thread:$0]  (%p3597_p12), %s710_s10, 64, %s712_s26, %s3645_s22, %s3381_s28, %s3381_s28, %s3382_s1  }
  0x62   : > { %s731_s18 = sshll.u32 %s730_s2, 4  ;;  %s733_s23 = sshll.u32 %s725_s25, 4  ;;  %s732_s18 = int_to_ptr.hbm [resolvable:$true] %s731_s18  ;;  %s734_s23 = int_to_ptr.vmem [resolvable:$true] %s733_s23 }
  0x63   : > { %2736 = dma.hbm_to_vmem [thread:$0]  (%p3597_p12), %s732_s18, 1024, %s734_s23, %s3645_s22, %s4163_s17, %s4163_s17, %s4162_s4  }
  0x64   : > { %s751_s10 = scalar_lea.hbm %s4166_s7, %s3671_s0  ;;  %s2489_s2 = sshll.u32 %s3643_s30, 4 }
  0x65   : > { %s752_s26 = sshll.u32 %s751_s10, 4  ;;  %s2690_s18 = sshll.u32 %s3368_s27, 4  ;;  %s753_s26 = int_to_ptr.hbm [resolvable:$true] %s752_s26 }
  0x66   : > { %2737 = dma.hbm_to_vmem [thread:$0]  (%p3597_p12), %s753_s26, 64, %s755_s15, %s3645_s22, %s3381_s28, %s3381_s28, %s3382_s1  }
  0x67   : > { %s4167_s8 = sld [smem:[#allocation48_spill]]  ;;  %s768_s3 = scalar_lea.vmem [#allocation14], %s2489_s2 }
  0x68   : > { %s776_s20 = sshll.u32 %s768_s3, 4  ;;  %s4168_s9 = sld [smem:[#allocation49_spill]]  ;;  %s777_s20 = int_to_ptr.vmem [resolvable:$true] %s776_s20 }
  0x69   : > { %s789_s11 = scalar_lea.vmem [#allocation15], %s3643_s30  ;;  %s4169_s14 = sld [smem:[#allocation54_spill]] }
  0x6a   : > { %s796_s15 = sshll.u32 %s789_s11, 4  ;;  %s864_s1 = scalar_lea.hbm %s4076_s16, %s3654_s24  ;;  %s797_s15 = int_to_ptr.vmem [resolvable:$true] %s796_s15 }
  0x6d   : > { %s773_s0 = scalar_lea.hbm %s4167_s8, %s2690_s18 }
  0x6e   : > { %s774_s13 = sshll.u32 %s773_s0, 4  ;;  %s792_s10 = scalar_lea.hbm %s4168_s9, %s3368_s27  ;;  %s775_s13 = int_to_ptr.hbm [resolvable:$true] %s774_s13 }
  0x6f   : > { %2738 = dma.hbm_to_vmem [thread:$0]  (%p3597_p12), %s775_s13, 256, %s777_s20, %s3645_s22, %s4163_s17, %s4163_s17, %s4162_s4  }
  0x70   : > { %s794_s26 = sshll.u32 %s792_s10, 4  ;;  %s836_s0 = scalar_lea.hbm %s4169_s14, %s2690_s18  ;;  %s795_s26 = int_to_ptr.hbm [resolvable:$true] %s794_s26 }
  0x71   : > { %2739 = dma.hbm_to_vmem [thread:$0]  (%p3597_p12), %s795_s26, 16, %s797_s15, %s3645_s22  }
  0x72   : > { %s837_s3 = sshll.u32 %s836_s0, 4  ;;  %s831_s13 = scalar_lea.vmem [#allocation16], %s2489_s2  ;;  %s838_s3 = int_to_ptr.hbm [resolvable:$true] %s837_s3 }
  0x73   : > { %s839_s20 = sshll.u32 %s831_s13, 4  ;;  %s865_s10 = sshll.u32 %s864_s1, 4  ;;  %s840_s20 = int_to_ptr.vmem [resolvable:$true] %s839_s20  ;;  %s866_s10 = int_to_ptr.hbm [resolvable:$true] %s865_s10 }
  0x74   : > { %2740 = dma.hbm_to_vmem [thread:$0]  (%p3597_p12), %s838_s3, 256, %s840_s20, %s3645_s22, %s4163_s17, %s4163_s17, %s4162_s4  }
  0x75   : > { %s859_s26 = scalar_lea.vmem [#allocation17], %s3651_s21 }
  0x76   : > { %s867_s11 = sshll.u32 %s859_s26, 4  ;;  %s868_s11 = int_to_ptr.vmem [resolvable:$true] %s867_s11 }
  0x77   : > { %2741 = dma.hbm_to_vmem [thread:$0]  (%p3597_p12), %s866_s10, 1024, %s868_s11, %s3645_s22, %s4163_s17, %s4163_s17, %s4162_s4  }
  0x78 PF: > { %885 = sbr.rel (%p3624_p2) target bundleno = 2236 (0x8bc), region = 100  ;;  %s4170_s2 = sld [smem:[#allocation26_spill]] (!%p3624_p2) }
  0x79   : > { %s4171_s18 = sld [smem:[#allocation34_spill]] (!%p3624_p2)  ;;  %s887_s15 = sand.u32 (!%p3624_p2), 1, %s3545_s29  }
  0x7a   : > { %s888_s25 = scalar_lea.sflag (!%p3624_p2), [#allocation4], %s887_s15 }
  0x7e   : > { %s4109_s24 = sand.u32 1, %s4170_s2  }
  0x7f   : > { %s3773_s21 = sshll.u32 %s4109_s24, 3  ;;  %p4172_p4 = scmp.ne.s32.totalorder %s4171_s18, 0 }
  0x81   : > { %3319 = dma.done.wait (%p4172_p4), %s888_s25, 128  }
  0x82   : > { %3321 = vsyncadd (%p4172_p4), %s888_s25, 4294967168 }
  0x83   : > { %3323 = dma.done.wait (%p70_p6), [#allocation7], 128  }
  0x84   : > { %3325 = vsyncadd (%p70_p6), [#allocation7], 4294967168  ;;  %s4173_s17 = sld [smem:[#allocation23_spill]] }
  0x8a   : > { %s3785_s4 = sand.u32 1, %s4173_s17  }
  0x8b   : > { %s2501_s19 = sshll.u32 %s3785_s4, 6 }
  0x8c   : > { %s3788_s23 = scalar_lea.vmem [#allocation8], %s2501_s19 }
  0x8d   : > { %3327 = dma.done.wait (%p3603_p13), %s888_s25, 4816  }
  0x8e   : > { %3329 = vsyncadd (%p3603_p13), %s888_s25, 4294962480  ;;  %s4175_s0 = sld [smem:[#allocation28_spill]]  ;;  %s2502_s3 = sshll.u32 %s3785_s4, 2 }
  0x8f   : > { %s2507_s29 = sshll.u32 %s3785_s4, 4  ;;  %s4177_s11 = sld [smem:[#allocation51_spill]] }
  0x90   : > { %s4178_s25 = sld [smem:[#allocation52_spill]]  ;;  %s3824_s1 = scalar_lea.vmem [#allocation9], %s2502_s3 }
  0x91   : > { %s4179_s12 = sld [smem:[#allocation53_spill]]  ;;  %s3826_s10 = scalar_lea.vmem [#allocation10], %s2501_s19 }
  0x92   : > { %s4180_s6 = sld [smem:[#allocation55_spill]]  ;;  %s3828_s26 = scalar_lea.vmem [#allocation11], %s2502_s3 }
  0x93   : > { %s4181_s14 = sld [smem:[#allocation56_spill]]  ;;  %s3832_s18 = scalar_lea.vmem [#allocation13], %s2502_s3 }
  0x94   : > { %p1120_p6 = scmp.lt.s32.totalorder %s4175_s0, 1  ;;  %s3834_s24 = scalar_lea.vmem [#allocation14], %s2507_s29 }
  0x95   : > { %s3837_s15 = scalar_lea.vmem [#allocation16], %s2507_s29  ;;  %p2511_p12 = scmp.ne.s32.totalorder %s4175_s0, 0 }
  0x96   : > { %s3798_s13 = scalar_select %p1120_p6, %s4175_s0, 1 }
  0x97   : > { %s4182_s8 = scalar_lea.vmem (!%p2511_p12), [#allocation3], %s3773_s21 }
  0x98   : > { %s1125_s2 = scalar_lea.vmem %s4177_s11, %s3798_s13  ;;  %s1128_s17 = scalar_lea.vmem %s4178_s25, %s3798_s13 }
  0x99   : > { %s1131_s5 = scalar_lea.vmem %s4179_s12, %s3798_s13  ;;  %s1134_s7 = scalar_lea.vmem %s4180_s6, %s3798_s13 }
  0x9a   : > { %s1137_s28 = scalar_lea.vmem %s4181_s14, %s3798_s13  ;;  %s3830_s11 = scalar_lea.vmem [#allocation12], %s2501_s19 }
  0x9b   : > { %s975_s12 = scalar_lea.vmem [#allocation15], %s3785_s4  ;;  %s3839_s6 = scalar_lea.vmem [#allocation17], %s2501_s19 }
  0x9c   : > { %s1119_s25 = scalar_lea.vmem [#allocation18], %s3773_s21  ;;  %1142 = sbr.rel (%p2511_p12) target bundleno = 165 (0xa5), region = 152 }
  0xa1   : > { %v1143_v0 = vld [vmem:[%s4182_s8] sm:$0xff]  ;;  %v1144_v1 = vld [vmem:[#allocation6] sm:$0xff]  ;;  %vm1146_vm0 = vcmask 261120  }
  0xa2   : > { %v1145_v2 = vadd.f32 %v1144_v1, %v1143_v0 }
  0xa4   : > { %1147 = vst.msk [vmem:[#allocation2] sm:$0xff] %vm1146_vm0, %v1145_v2 }
  0xa5 PF: > { %v2694_v3 = vld [vmem:[%s3788_s23 + $0x8] sm:$0xff]  ;;  %v2696_v4 = vld [vmem:[%s3788_s23 + $0x18] sm:$0xff]  ;;  %v2704_v6 = vld [vmem:[%s3826_s10 + $0x18] sm:$0xff]  ;;  %vm1194_vm1 = vcmask 261120   ;;  %vm1558_vm2 = vcmask 64512   ;;  %vm1694_vm3 = vcmask 1043456  }
  0xa6   : > { %v2700_v5 = vld [vmem:[%s3788_s23 + $0x38] sm:$0xff]  ;;  %1204 = vmatpush.bf16.msra.mxu0 %v2694_v3  ;;  %1229 = vmatpush.bf16.msra.mxu2 %v2696_v4  ;;  %v2693_v7 = vld [vmem:[%s3788_s23] sm:$0xff]  ;;  %v2695_v8 = vld [vmem:[%s3788_s23 + $0x10] sm:$0xff]  ;;  %s4183_s4 = sld [smem:[#allocation50_spill]] }
  0xa7   : > { %1279 = vmatpush.bf16.msra.mxu3 %v2700_v5  ;;  %1361 = vmatpush.bf16.msra.mxu1 %v2704_v6  ;;  %v2699_v10 = vld [vmem:[%s3788_s23 + $0x30] sm:$0xff]  ;;  %v2703_v11 = vld [vmem:[%s3826_s10 + $0x10] sm:$0xff]  ;;  %v2698_v12 = vld [vmem:[%s3788_s23 + $0x28] sm:$0xff] }
  0xa8   : > { %v2702_v13 = vld [vmem:[%s3826_s10 + $0x8] sm:$0xff]  ;;  %v2708_v15 = vld [vmem:[%s3826_s10 + $0x38] sm:$0xff]  ;;  %v2701_v17 = vld [vmem:[%s3826_s10] sm:$0xff] }
  0xa9   : > { %v2697_v16 = vld [vmem:[%s3788_s23 + $0x20] sm:$0xff]  ;;  %v2707_v18 = vld [vmem:[%s3826_s10 + $0x30] sm:$0xff]  ;;  %v2706_v19 = vld [vmem:[%s3826_s10 + $0x28] sm:$0xff] }
  0xaa   : > { %1205 = vmatpush.bf16.msra.mxu0 %v2693_v7  ;;  %1230 = vmatpush.bf16.msra.mxu2 %v2695_v8  ;;  %v2712_v20 = vld [vmem:[%s3830_s11 + $0x18] sm:$0xff]  ;;  %v2711_v21 = vld [vmem:[%s3830_s11 + $0x10] sm:$0xff]  ;;  %v2710_v23 = vld [vmem:[%s3830_s11 + $0x8] sm:$0xff] }
  0xab   : > { %v3851_v9 = vld [vmem:[#allocation2] sm:$0xff]  ;;  %1280 = vmatpush.bf16.msra.mxu3 %v2699_v10  ;;  %1362 = vmatpush.bf16.msra.mxu1 %v2703_v11  ;;  %v2705_v22 = vld [vmem:[%s3826_s10 + $0x20] sm:$0xff]  ;;  %v2709_v24 = vld [vmem:[%s3830_s11] sm:$0xff] }
  0xac   : > { %v1149_v14 = vpack.c.bf16 %v3851_v9, %v3851_v9  ;;  %v2716_v25 = vld [vmem:[%s3830_s11 + $0x38] sm:$0xff]  ;;  %v2715_v26 = vld [vmem:[%s3830_s11 + $0x30] sm:$0xff]  ;;  %v2714_v27 = vld [vmem:[%s3830_s11 + $0x28] sm:$0xff]  ;;  %s4184_s19 = scalar_lea.vmem %s4183_s4, %s3798_s13 }
  0xad   : > { %v2713_v28 = vld [vmem:[%s3830_s11 + $0x20] sm:$0xff]  ;;  %v2863_v29 = vld [vmem:[%s3828_s26 + $0x1] ss:$0 sm:$0xff]  ;;  %v2864_v34 = vld [vmem:[%s3824_s1 + $0x1] ss:$0 sm:$0xff] }
  0xae   : > { %1254 = vmatpush.bf16.msrb.mxu2 %v2698_v12  ;;  %1336 = vmatpush.bf16.msrb.mxu0 %v2702_v13  ;;  %v2866_v42 = vld [vmem:[%s3828_s26] ss:$0 sm:$0xff]  ;;  %v2862_v46 = vld [vmem:[%s3824_s1] ss:$0 sm:$0xff]  ;;  %v2870_v49 = vld [vmem:[%s3832_s18 + $0x1] ss:$0 sm:$0xff] }
  0xaf   : > { %2520 = vmatmul.msk.bf16.vlgmr.msra.gmra.mxu0 %vm1194_vm1, %v1149_v14  ;;  %2529 = vmatmul.msk.bf16.vlgmr.msra.gmra.mxu2 %vm1194_vm1, %v1149_v14  ;;  %v2868_v51 = vld [vmem:[%s3828_s26 + $0x3] ss:$0 sm:$0xff]  ;;  %v2865_v58 = vld [vmem:[%s3824_s1 + $0x3] ss:$0 sm:$0xff]  ;;  %v2869_v6 = vld [vmem:[%s3828_s26 + $0x2] ss:$0 sm:$0xff] }
  0xb0   : > { %2547 = vmatmul.msk.bf16.vlgmr.msra.gmra.mxu3 %vm1194_vm1, %v1149_v14  ;;  %2565 = vmatmul.msk.bf16.vlgmr.msra.gmra.mxu1 %vm1194_vm1, %v1149_v14  ;;  %v2867_v10 = vld [vmem:[%s3824_s1 + $0x2] ss:$0 sm:$0xff] }
  0xb1   : > { %1411 = vmatpush.bf16.msrb.mxu3 %v2708_v15  ;;  %1493 = vmatpush.bf16.msrb.mxu1 %v2712_v20 }
  0xb2   : > { %1255 = vmatpush.bf16.msrb.mxu2 %v2697_v16  ;;  %1337 = vmatpush.bf16.msrb.mxu0 %v2701_v17  ;;  %v2871_v16 = vld [vmem:[%s3832_s18] ss:$0 sm:$0xff] }
  0xb5   : > { %1412 = vmatpush.bf16.msrb.mxu3 %v2707_v18  ;;  %1494 = vmatpush.bf16.msrb.mxu1 %v2711_v21 }
  0xb6   : > { %1386 = vmatpush.bf16.msra.mxu2 %v2706_v19  ;;  %1468 = vmatpush.bf16.msra.mxu0 %v2710_v23 }
  0xb9   : > { %1543 = vmatpush.bf16.msra.mxu3 %v2716_v25 }
  0xba   : > { %1387 = vmatpush.bf16.msra.mxu2 %v2705_v22  ;;  %1469 = vmatpush.bf16.msra.mxu0 %v2709_v24  ;;  %v2872_v22 = vld [vmem:[%s3832_s18 + $0x3] ss:$0 sm:$0xff] }
  0xbd   : > { %1544 = vmatpush.bf16.msra.mxu3 %v2715_v26 }
  0xbf   : > { %2538 = vmatmul.msk.bf16.vlgmr.msrb.gmra.mxu2 %vm1194_vm1, %v1149_v14  ;;  %2556 = vmatmul.msk.bf16.vlgmr.msrb.gmra.mxu0 %vm1194_vm1, %v1149_v14 }
  0xc0   : > { %2583 = vmatmul.msk.bf16.vlgmr.msrb.gmra.mxu3 %vm1194_vm1, %v1149_v14  ;;  %2601 = vmatmul.msk.bf16.vlgmr.msrb.gmra.mxu1 %vm1194_vm1, %v1149_v14 }
  0xc1   : > { %1518 = vmatpush.bf16.msrb.mxu2 %v2714_v27  ;;  %v2873_v27 = vld [vmem:[%s3832_s18 + $0x2] ss:$0 sm:$0xff] }
  0xc5   : > { %1519 = vmatpush.bf16.msrb.mxu2 %v2713_v28 }
  0xcf   : > { %2574 = vmatmul.msk.bf16.vlgmr.msra.gmra.mxu2 %vm1194_vm1, %v1149_v14  ;;  %2592 = vmatmul.msk.bf16.vlgmr.msra.gmra.mxu0 %vm1194_vm1, %v1149_v14 }
  0xd0   : > { %2619 = vmatmul.msk.bf16.vlgmr.msra.gmra.mxu3 %vm1194_vm1, %v1149_v14 }
  0xdf   : > { %2610 = vmatmul.msk.bf16.vlgmr.msrb.gmra.mxu2 %vm1194_vm1, %v1149_v14 }
 0x12c   : > { %v1207_v30 = vpop.f32.mrf.mxu0 }
 0x12d   : > { %v1364_v31 = vpop.f32.mrf.mxu1  ;;  %v1208_v52 = vadd.f32 %v2862_v46, %v1207_v30 }
 0x12e   : > { %v1365_v32 = vadd.f32 %v2863_v29, %v1364_v31 }
 0x12f   : > { %v1550_v61 = vpack.c.bf16 %v1208_v52, %v1208_v52 }
 0x130   : > { %v1555_v33 = vpack.c.bf16 %v1365_v32, %v1365_v32 }
 0x132   : > { %v1582_v35 = vsel %vm1558_vm2, %v1555_v33, 0  ;;  %v1232_v36 = vpop.f32.mrf.mxu2 }
 0x133   : > { %v1282_v37 = vpop.f32.mrf.mxu3  ;;  %1591 = vmatpush.bf16.xpose.msra.mxu1 %v1582_v35  ;;  %v1233_v38 = vadd.f32 %v2864_v34, %v1232_v36 }
 0x134   : > { %v1209_v39 = vpop.f32.mrf.mxu0  ;;  %v1283_v1 = vadd.f32 %v2865_v58, %v1282_v37 }
 0x135   : > { %v1366_v40 = vpop.f32.mrf.mxu1  ;;  %v1551_v41 = vpack.c.bf16 %v1233_v38, %v1233_v38 }
 0x136   : > { %v1553_v5 = vpack.c.bf16 %v1283_v1, %v1283_v1 }
 0x13a   : > { %2621 = vmatmul.msk.bf16.vlgmr.msra.gmra.mxu1 %vm1558_vm2, %v1551_v41  ;;  %v1234_v43 = vpop.f32.mrf.mxu2 }
 0x13b   : > { %v1284_v44 = vpop.f32.mrf.mxu3 }
 0x13c   : > { %v1339_v45 = vpop.f32.mrf.mxu0 }
 0x13d   : > { %v1340_v47 = vadd.f32 %v2866_v42, %v1339_v45  ;;  %v1496_v50 = vpop.f32.mrf.mxu1 }
 0x13e   : > { %v1497_v54 = vadd.f32 %v2870_v49, %v1496_v50 }
 0x13f   : > { %v1554_v48 = vpack.c.bf16 %v1340_v47, %v1340_v47 }
 0x140   : > { %v1688_v57 = vpack.c.bf16 %v1497_v54, %v1497_v54 }
 0x141   : > { %v1563_v53 = vsel %vm1558_vm2, %v1554_v48, 0 }
 0x142   : > { %v1257_v55 = vpop.f32.mrf.mxu2  ;;  %1572 = vmatpush.bf16.xpose.msrb.mxu0 %v1563_v53  ;;  %v1715_v62 = vsel %vm1694_vm3, %v1688_v57, 0 }
 0x143   : > { %v1414_v56 = vpop.f32.mrf.mxu3  ;;  %1724 = vmatpush.bf16.msrb.mxu1 %v1715_v62  ;;  %v1258_v13 = vadd.f32 %v2867_v10, %v1257_v55 }
 0x144   : > { %v1415_v59 = vadd.f32 %v2868_v51, %v1414_v56  ;;  %v1341_v60 = vpop.f32.mrf.mxu0 }
 0x145   : > { %v1498_v0 = vpop.f32.mrf.mxu1  ;;  %v1552_v15 = vpack.c.bf16 %v1258_v13, %v1258_v13 }
 0x146   : > { %v1557_v63 = vpack.c.bf16 %v1415_v59, %v1415_v59 }
 0x148   : > { %v1620_v2 = vsel %vm1558_vm2, %v1557_v63, 0 }
 0x149   : > { %1629 = vmatpush.bf16.xpose.msrb.mxu3 %v1620_v2  ;;  %2620 = vmatmul.msk.bf16.vlgmr.msrb.gmra.mxu0 %vm1558_vm2, %v1550_v61 }
 0x14a   : > { %v1259_v3 = vpop.f32.mrf.mxu2 }
 0x14b   : > { %v1416_v4 = vpop.f32.mrf.mxu3 }
 0x14c   : > { %v1471_v17 = vpop.f32.mrf.mxu0 }
 0x14d   : > { %v1472_v18 = vadd.f32 %v2871_v16, %v1471_v17 }
 0x14f   : > { %v1687_v19 = vpack.c.bf16 %v1472_v18, %v1472_v18 }
 0x150   : > { %2623 = vmatmul.msk.bf16.vlgmr.msrb.gmra.mxu3 %vm1558_vm2, %v1553_v5 }
 0x151   : > { %v1696_v20 = vsel %vm1694_vm3, %v1687_v19, 0 }
 0x152   : > { %v1389_v7 = vpop.f32.mrf.mxu2  ;;  %1705 = vmatpush.bf16.msra.mxu0 %v1696_v20 }
 0x153   : > { %v1390_v8 = vadd.f32 %v2869_v6, %v1389_v7  ;;  %v1546_v23 = vpop.f32.mrf.mxu3 }
 0x154   : > { %v1473_v21 = vpop.f32.mrf.mxu0  ;;  %v1547_v24 = vadd.f32 %v2872_v22, %v1546_v23  ;;  %v1772_v23 = vld [vmem:[%s3834_s24] sm:$0xf] }
 0x155   : > { %v1556_v11 = vpack.c.bf16 %v1390_v8, %v1390_v8 }
 0x156   : > { %v1690_v25 = vpack.c.bf16 %v1547_v24, %v1547_v24  ;;  %v1780_v24 = vsel %vm1694_vm3, %v1772_v23, 0 }
 0x157   : > { %v1601_v12 = vsel %vm1558_vm2, %v1556_v11, 0  ;;  %1789 = vmatpush.bf16.msrb.mxu0 %v1780_v24  ;;  %v2721_v24 = vld [vmem:[%s3839_s6 + $0x10] sm:$0xff] }
 0x158   : > { %1610 = vmatpush.bf16.xpose.msra.mxu2 %v1601_v12  ;;  %v1753_v26 = vsel %vm1694_vm3, %v1690_v25, 0  ;;  %v1773_v25 = vld [vmem:[%s3834_s24 + $0x4] sm:$0xf] }
 0x159   : > { %1762 = vmatpush.bf16.msra.mxu3 %v1753_v26  ;;  %v1799_v26 = vsel %vm1694_vm3, %v1773_v25, 0 }
 0x15a   : > { %v1391_v14 = vpop.f32.mrf.mxu2  ;;  %1808 = vmatpush.bf16.msra.mxu1 %v1799_v26 }
 0x15b   : > { %v1548_v28 = vpop.f32.mrf.mxu3 }
 0x15f   : > { %2622 = vmatmul.msk.bf16.vlgmr.msra.gmra.mxu2 %vm1558_vm2, %v1552_v15 }
 0x162   : > { %v1521_v29 = vpop.f32.mrf.mxu2 }
 0x163   : > { %v1522_v30 = vadd.f32 %v2873_v27, %v1521_v29  ;;  %v1774_v29 = vld [vmem:[%s3834_s24 + $0x8] sm:$0xf] }
 0x165   : > { %v1689_v31 = vpack.c.bf16 %v1522_v30, %v1522_v30  ;;  %v1818_v30 = vsel %vm1694_vm3, %v1774_v29, 0  ;;  %v2876_v29 = vld [vmem:[%s1125_s2] ss:$0 sm:$0xff] }
 0x167   : > { %v1734_v32 = vsel %vm1694_vm3, %v1689_v31, 0  ;;  %v1775_v31 = vld [vmem:[%s3834_s24 + $0xc] sm:$0xf]  ;;  %s4190_s24 = sld [smem:[#allocation28_spill]] }
 0x168   : > { %1743 = vmatpush.bf16.msrb.mxu2 %v1734_v32  ;;  %v1837_v32 = vsel %vm1694_vm3, %v1775_v31, 0 }
 0x169   : > { %1846 = vmatpush.bf16.msrb.mxu3 %v1837_v32 }
 0x16a   : > { %v1523_v33 = vpop.f32.mrf.mxu2 }
 0x16c   : > { %1827 = vmatpush.bf16.msra.mxu2 %v1818_v30 }
 0x16d   : > { %p2673_p13 = scmp.ne.s32.totalorder %s4190_s24, 1 }
 0x16e   : > { %s4192_s9 = sld [smem:[#allocation58_spill]] (!%p2673_p13) }
 0x1b7   : > { %v1593_v34 = vpop.f32.mrf.mxu1 }
 0x1b8   : > { %v1636_v39 = vmul.f32 0.35355338, %v1593_v34 }
 0x1ba   : > { %v1642_v41 = vsel %vm1558_vm2, %v1636_v39, -inf }
 0x1bf   : > { %v1595_v35 = vpop.f32.mrf.mxu1 }
 0x1c6   : > { %v1574_v36 = vpop.f32.mrf.mxu0 }
 0x1c7   : > { %v1635_v37 = vmul.f32 0.35355338, %v1574_v36 }
 0x1c9   : > { %v1639_v38 = vsel %vm1558_vm2, %v1635_v37, -inf }
 0x1ca   : > { %1640 = vmax.xlane.f32.xlu1 %v1639_v38 }
 0x1ce   : > { %v1576_v40 = vpop.f32.mrf.mxu0 }
 0x1d2   : > { %1643 = vmax.xlane.f32.xlu1 %v1642_v41 }
 0x1d3   : > { %v1631_v42 = vpop.f32.mrf.mxu3 }
 0x1d4   : > { %v1638_v47 = vmul.f32 0.35355338, %v1631_v42 }
 0x1d6   : > { %v1648_v49 = vsel %vm1558_vm2, %v1638_v47, -inf }
 0x1db   : > { %v1633_v43 = vpop.f32.mrf.mxu3 }
 0x1e2   : > { %v1612_v44 = vpop.f32.mrf.mxu2 }
 0x1e3   : > { %v1637_v45 = vmul.f32 0.35355338, %v1612_v44 }
 0x1e5   : > { %v1645_v46 = vsel %vm1558_vm2, %v1637_v45, -inf }
 0x1e6   : > { %1646 = vmax.xlane.f32.xlu0 %v1645_v46 }
 0x1ea   : > { %v1614_v48 = vpop.f32.mrf.mxu2 }
 0x1ee   : > { %1649 = vmax.xlane.f32.xlu0 %v1648_v49 }
 0x23d   : > { %v1641_v50 = vpop.xlane.xlu1 %1640 }
 0x23e   : > { %v1651_v51 = vsub.f32 %v1635_v37, %v1641_v50 }
 0x240   : > { %v1655_v52 = vmul.f32 1.442695, %v1651_v51 }
 0x242   : > { %2881 = vpow2.f32 %v1655_v52 }
 0x245   : > { %v1644_v53 = vpop.xlane.xlu1 %1643 }
 0x246   : > { %v1652_v54 = vsub.f32 %v1636_v39, %v1644_v53 }
 0x248   : > { %v2882_v55 = vpop.eup %2881  ;;  %v1657_v56 = vmul.f32 1.442695, %v1652_v54 }
 0x249   : > { %v1663_v57 = vsel %vm1558_vm2, %v2882_v55, 0.0 }
 0x24a   : > { %2883 = vpow2.f32 %v1657_v56  ;;  %1664 = vadd.xlane.f32.xlu0 %v1663_v57 }
 0x250   : > { %v2884_v58 = vpop.eup %2883 }
 0x251   : > { %v1666_v59 = vsel %vm1558_vm2, %v2884_v58, 0.0 }
 0x252   : > { %1667 = vadd.xlane.f32.xlu1 %v1666_v59 }
 0x259   : > { %v1647_v60 = vpop.xlane.xlu0 %1646 }
 0x25a   : > { %v1653_v61 = vsub.f32 %v1637_v45, %v1647_v60 }
 0x25c   : > { %v1659_v62 = vmul.f32 1.442695, %v1653_v61 }
 0x25e   : > { %2885 = vpow2.f32 %v1659_v62  ;;  %v3383_v62 = vmov 32.0  }
 0x261   : > { %v1650_v63 = vpop.xlane.xlu0 %1649 }
 0x262   : > { %v1654_v0 = vsub.f32 %v1638_v47, %v1650_v63 }
 0x264   : > { %v2886_v1 = vpop.eup %2885  ;;  %v1661_v2 = vmul.f32 1.442695, %v1654_v0 }
 0x265   : > { %v1669_v3 = vsel %vm1558_vm2, %v2886_v1, 0.0 }
 0x266   : > { %2887 = vpow2.f32 %v1661_v2  ;;  %1670 = vadd.xlane.f32.xlu2 %v1669_v3 }
 0x26c   : > { %v2888_v4 = vpop.eup %2887 }
 0x26d   : > { %v1672_v5 = vsel %vm1558_vm2, %v2888_v4, 0.0 }
 0x26e   : > { %1673 = vadd.xlane.f32.xlu2 %v1672_v5 }
 0x2bd   : > { %v1665_v6 = vpop.xlane.xlu0 %1664 }
 0x2be   : > { %2889 = vrcp.f32 %v1665_v6 }
 0x2c4   : > { %v2890_v7 = vpop.eup %2889 }
 0x2c5   : > { %v1679_v8 = vmul.f32 %v2890_v7, %v2882_v55  ;;  %v1668_v10 = vpop.xlane.xlu1 %1667  ;;  %v2874_v55 = vld [vmem:[%s975_s12] ss:$0 sm:$0xff] }
 0x2c6   : > { %2891 = vrcp.f32 %v1668_v10  ;;  %v2718_v10 = vld [vmem:[%s3837_s15 + $0x8] sm:$0xff] }
 0x2c7   : > { %v1683_v11 = vpack.c.bf16 %v1679_v8, %v1679_v8 }
 0x2c9   : > { %2624 = vmatmul.msk.bf16.vlgmr.msra.gmra.mxu0 %vm1558_vm2, %v1683_v11  ;;  %v2717_v11 = vld [vmem:[%s3837_s15] sm:$0xff] }
 0x2ca   : > { %1934 = vmatpush.bf16.msra.mxu0 %v2718_v10 }
 0x2cc   : > { %v2892_v12 = vpop.eup %2891 }
 0x2cd   : > { %v1680_v13 = vmul.f32 %v2892_v12, %v2884_v58  ;;  %v2726_v12 = vld [vmem:[%s3839_s6 + $0x38] sm:$0xff] }
 0x2ce   : > { %1935 = vmatpush.bf16.msra.mxu0 %v2717_v11 }
 0x2cf   : > { %v1684_v14 = vpack.c.bf16 %v1680_v13, %v1680_v13 }
 0x2d1   : > { %2625 = vmatmul.msk.bf16.vlgmr.msrb.gmra.mxu1 %vm1558_vm2, %v1684_v14 }
 0x2d2   : > { %2011 = vmatpush.bf16.msrb.mxu1 %v2726_v12 }
 0x2d9   : > { %v1671_v15 = vpop.xlane.xlu2 %1670 }
 0x2da   : > { %2893 = vrcp.f32 %v1671_v15  ;;  %v2725_v15 = vld [vmem:[%s3839_s6 + $0x30] sm:$0xff] }
 0x2db   : > { %2012 = vmatpush.bf16.msrb.mxu1 %v2725_v15 }
 0x2e0   : > { %v2894_v16 = vpop.eup %2893 }
 0x2e1   : > { %v1681_v17 = vmul.f32 %v2894_v16, %v2886_v1  ;;  %v1674_v18 = vpop.xlane.xlu2 %1673 }
 0x2e2   : > { %2895 = vrcp.f32 %v1674_v18  ;;  %v2723_v18 = vld [vmem:[%s3839_s6 + $0x20] sm:$0xff] }
 0x2e3   : > { %v1685_v19 = vpack.c.bf16 %v1681_v17, %v1681_v17  ;;  %2897 = vrcp.f32 %v3383_v62  ;;  %v2724_v17 = vld [vmem:[%s3839_s6 + $0x28] sm:$0xff]  ;;  %v2879_v62 = vld [vmem:[%s1128_s17] ss:$0 sm:$0xff] }
 0x2e4   : > { %2013 = vmatpush.bf16.msrb.mxu1 %v2724_v17 }
 0x2e5   : > { %2626 = vmatmul.msk.bf16.vlgmr.msrb.gmra.mxu2 %vm1558_vm2, %v1685_v19 }
 0x2e8   : > { %v2896_v20 = vpop.eup %2895  ;;  %2014 = vmatpush.bf16.msrb.mxu1 %v2723_v18 }
 0x2e9   : > { %v1682_v21 = vmul.f32 %v2896_v20, %v2888_v4  ;;  %v2898_v63 = vpop.eup %2897 }
 0x2ea   : > { %v1871_v0 = vmul.f32 32.0, %v2898_v63  ;;  %vm1875_vm4 = vweird.f32 %v2898_v63 }
 0x2eb   : > { %v1686_v22 = vpack.c.bf16 %v1682_v21, %v1682_v21  ;;  %v2722_v21 = vld [vmem:[%s3839_s6 + $0x18] sm:$0xff] }
 0x2ec   : > { %v1872_v1 = vsub.f32 1.0, %v1871_v0  ;;  %2015 = vmatpush.bf16.msrb.mxu1 %v2722_v21  ;;  %v2880_v0 = vld [vmem:[%s1131_s5] ss:$0 sm:$0xff] }
 0x2ed   : > { %2627 = vmatmul.msk.bf16.vlgmr.msra.gmra.mxu3 %vm1558_vm2, %v1686_v22 }
 0x2ee   : > { %v1873_v2 = vmul.f32 %v2898_v63, %v1872_v1 }
 0x2f0   : > { %v1874_v3 = vadd.f32 %v2898_v63, %v1873_v2  ;;  %2016 = vmatpush.bf16.msrb.mxu1 %v2721_v24 }
 0x2f2   : > { %v3941_v4 = vsel %vm1875_vm4, %v2898_v63, %v1874_v3 }
 0x346   : > { %v1707_v27 = vpop.f32.mrf.mxu0 }
 0x347   : > { %v1768_v28 = vpack.c.bf16 %v1707_v27, %v1707_v27  ;;  %v2875_v27 = vld [vmem:[%s4184_s19] ss:$0 sm:$0xff] }
 0x349   : > { %2628 = vmatmul.msk.bf16.vlgmr.msrb.gmra.mxu0 %vm1558_vm2, %v1768_v28 }
 0x34e   : > { %v1709_v33 = vpop.f32.mrf.mxu0  ;;  %v1726_v34 = vpop.f32.mrf.mxu1 }
 0x34f   : > { %v1769_v35 = vpack.c.bf16 %v1726_v34, %v1726_v34  ;;  %v2720_v34 = vld [vmem:[%s3839_s6 + $0x8] sm:$0xff] }
 0x350   : > { %2017 = vmatpush.bf16.msrb.mxu1 %v2720_v34 }
 0x351   : > { %2629 = vmatmul.msk.bf16.vlgmr.msra.gmra.mxu1 %vm1558_vm2, %v1769_v35  ;;  %v2719_v35 = vld [vmem:[%s3839_s6] sm:$0xff]  ;;  %s4191_s6 = sld [smem:[#allocation57_spill]] (!%p2673_p13) }
 0x354   : > { %2018 = vmatpush.bf16.msrb.mxu1 %v2719_v35 }
 0x356   : > { %v1728_v36 = vpop.f32.mrf.mxu1 }
 0x357   : > { %v2877_v36 = vld [vmem:[%s1134_s7] ss:$0 sm:$0xff] }
 0x368   : > { %v1745_v37 = vpop.f32.mrf.mxu2 }
 0x369   : > { %v1770_v38 = vpack.c.bf16 %v1745_v37, %v1745_v37 }
 0x36b   : > { %2630 = vmatmul.msk.bf16.vlgmr.msra.gmra.mxu2 %vm1558_vm2, %v1770_v38 }
 0x370   : > { %v1747_v39 = vpop.f32.mrf.mxu2  ;;  %v1764_v40 = vpop.f32.mrf.mxu3 }
 0x371   : > { %v1771_v41 = vpack.c.bf16 %v1764_v40, %v1764_v40 }
 0x373   : > { %2631 = vmatmul.msk.bf16.vlgmr.msrb.gmra.mxu3 %vm1558_vm2, %v1771_v41 }
 0x378   : > { %v1766_v42 = vpop.f32.mrf.mxu3 }
 0x379   : > { %v2878_v42 = vld [vmem:[%s1137_s28] ss:$0 sm:$0xff] }
 0x3c6   : > { %v1791_v43 = vpop.f32.mrf.mxu0 }
 0x3c7   : > { %v1852_v49 = vsel %vm1194_vm1, %v1791_v43, 0.0 }
 0x3ce   : > { %v1793_v44 = vpop.f32.mrf.mxu0  ;;  %v1810_v45 = vpop.f32.mrf.mxu1 }
 0x3cf   : > { %v1853_v48 = vsel %vm1194_vm1, %v1810_v45, 0.0 }
 0x3d0   : > { %v1854_v51 = vadd.f32 %v1853_v48, %v1852_v49 }
 0x3d6   : > { %v1812_v46 = vpop.f32.mrf.mxu1 }
 0x3ee   : > { %v1829_v47 = vpop.f32.mrf.mxu2 }
 0x3ef   : > { %v1855_v50 = vsel %vm1194_vm1, %v1829_v47, 0.0 }
 0x3f0   : > { %v1856_v52 = vadd.f32 %v1855_v50, %v1854_v51 }
 0x3f6   : > { %v1831_v53 = vpop.f32.mrf.mxu2  ;;  %v1848_v54 = vpop.f32.mrf.mxu3 }
 0x3f7   : > { %v1857_v56 = vsel %vm1194_vm1, %v1848_v54, 0.0 }
 0x3f8   : > { %v1858_v57 = vadd.f32 %v1857_v56, %v1856_v52 }
 0x3fa   : > { %v1863_v58 = vadd.f32 %v2874_v55, %v1858_v57 }
 0x3fc   : > { %v1864_v59 = vadd.f32 %v1863_v58, %v3851_v9 }
 0x3fe   : > { %v1850_v60 = vpop.f32.mrf.mxu3  ;;  %v1867_v61 = vsel %vm1194_vm1, %v1864_v59, 0.0 }
 0x3ff   : > { %1868 = vadd.xlane.f32.xlu2 %v1867_v61 }
 0x472   : > { %v1869_v5 = vpop.xlane.xlu2 %1868 }
 0x473   : > { %v1877_v9 = vmul.f32 %v3941_v4, %v1869_v5 }
 0x475   : > { %v1878_v6 = vsub.f32 %v1864_v59, %v1877_v9 }
 0x477   : > { %v1879_v7 = vmul.f32 %v1878_v6, %v1878_v6 }
 0x479   : > { %v1880_v8 = vsel %vm1194_vm1, %v1879_v7, 0.0 }
 0x47a   : > { %1881 = vadd.xlane.f32.xlu0 %v1880_v8 }
 0x4ed   : > { %v1882_v13 = vpop.xlane.xlu0 %1881 }
 0x4ee   : > { %v1883_v14 = vmul.f32 %v1882_v13, %v3941_v4 }
 0x4f0   : > { %v1884_v16 = vadd.f32 1e-05, %v1883_v14 }
 0x4f2   : > { %2899 = vrsqrt.f32 %v1884_v16  ;;  %vm1891_vm6 = vweird.f32 %v1884_v16 }
 0x4f8   : > { %v2900_v19 = vpop.eup %2899 }
 0x4f9   : > { %v1886_v20 = vmul.f32 %v2900_v19, %v1884_v16  ;;  %vm1892_vm5 = vweird.f32 %v2900_v19 }
 0x4fa   : > { %vm1893_vm7 = vmor %vm1891_vm6, %vm1892_vm5 }
 0x4fb   : > { %v1887_v22 = vmul.f32 %v2900_v19, %v1886_v20 }
 0x4fd   : > { %v1888_v23 = vmul.f32 0.5, %v1887_v22 }
 0x4ff   : > { %v1889_v25 = vsub.f32 1.5, %v1888_v23 }
 0x501   : > { %v1890_v26 = vmul.f32 %v2900_v19, %v1889_v25 }
 0x503   : > { %v1894_v28 = vsel %vm1893_vm7, %v2900_v19, %v1890_v26 }
 0x504   : > { %v1895_v30 = vmul.f32 %v1894_v28, %v1878_v6 }
 0x506   : > { %v1899_v31 = vmul.f32 %v2875_v27, %v1895_v30 }
 0x508   : > { %v1903_v32 = vadd.f32 %v2876_v29, %v1899_v31 }
 0x50a   : > { %v1904_v33 = vpack.c.bf16 %v1903_v32, %v1903_v32 }
 0x50c   : > { %2640 = vmatmul.msk.bf16.vlgmr.msra.gmra.mxu0 %vm1194_vm1, %v1904_v33 }
 0x589   : > { %v1937_v37 = vpop.f32.mrf.mxu0 }
 0x58a   : > { %v1938_v38 = vadd.f32 %v2877_v36, %v1937_v37 }
 0x58c   : > { %v1941_v39 = vmax.f32 %v1938_v38, 0.0 }
 0x58e   : > { %v1942_v40 = vpack.c.bf16 %v1941_v39, %v1941_v39 }
 0x590   : > { %2019 = vmatmul.bf16.vlgmr.msrb.gmra.mxu1 %v1942_v40 }
 0x591   : > { %v1939_v41 = vpop.f32.mrf.mxu0 }
 0x60d   : > { %v2020_v43 = vpop.f32.mrf.mxu1 }
 0x60e   : > { %v2021_v44 = vadd.f32 %v2878_v42, %v2020_v43 }
 0x610   : > { %v2024_v45 = vadd.f32 %v2021_v44, %v1903_v32 }
 0x612   : > { %v2027_v46 = vsel %vm1194_vm1, %v2024_v45, 0.0 }
 0x613   : > { %2028 = vadd.xlane.f32.xlu1 %v2027_v46 }
 0x615   : > { %v2022_v47 = vpop.f32.mrf.mxu1 }
 0x686   : > { %v2029_v48 = vpop.xlane.xlu1 %2028 }
 0x687   : > { %v2030_v49 = vmul.f32 %v2029_v48, %v3941_v4 }
 0x689   : > { %v2031_v50 = vsub.f32 %v2024_v45, %v2030_v49 }
 0x68b   : > { %v2032_v51 = vmul.f32 %v2031_v50, %v2031_v50 }
 0x68d   : > { %v2033_v52 = vsel %vm1194_vm1, %v2032_v51, 0.0 }
 0x68e   : > { %2034 = vadd.xlane.f32.xlu2 %v2033_v52 }
 0x701   : > { %v2035_v53 = vpop.xlane.xlu2 %2034 }
 0x702   : > { %v2036_v54 = vmul.f32 %v2035_v53, %v3941_v4 }
 0x704   : > { %v2037_v55 = vadd.f32 1e-05, %v2036_v54 }
 0x706   : > { %2901 = vrsqrt.f32 %v2037_v55  ;;  %vm2044_vm9 = vweird.f32 %v2037_v55 }
 0x70c   : > { %v2902_v56 = vpop.eup %2901 }
 0x70d   : > { %v2039_v57 = vmul.f32 %v2902_v56, %v2037_v55  ;;  %vm2045_vm8 = vweird.f32 %v2902_v56 }
 0x70e   : > { %vm2046_vm10 = vmor %vm2044_vm9, %vm2045_vm8 }
 0x70f   : > { %v2040_v58 = vmul.f32 %v2902_v56, %v2039_v57 }
 0x711   : > { %v2041_v59 = vmul.f32 0.5, %v2040_v58 }
 0x713   : > { %v2042_v60 = vsub.f32 1.5, %v2041_v59 }
 0x715   : > { %v2043_v61 = vmul.f32 %v2902_v56, %v2042_v60 }
 0x717   : > { %v2047_v63 = vsel %vm2046_vm10, %v2902_v56, %v2043_v61 }
 0x718   : > { %v2048_v1 = vmul.f32 %v2047_v63, %v2031_v50 }
 0x71a   : > { %v2052_v2 = vmul.f32 %v2879_v62, %v2048_v1  ;;  %2061 = sbr.rel (%p2673_p13) target bundleno = 2214 (0x8a6), region = 156 }
 0x71c   : > { %v2056_v3 = vadd.f32 %v2880_v0, %v2052_v2 }
 0x71e   : > { %2057 = vst.msk [vmem:[#allocation2] sm:$0xff] %vm1194_vm1, %v2056_v3 }
 0x71f   : > { %v2728_v4 = vld [vmem:[%s4191_s6 + $0x8] sm:$0xff]  ;;  %v2727_v5 = vld [vmem:[%s4191_s6] sm:$0xff]  ;;  %v2062_v9 = vpack.c.bf16 %v2056_v3, %v2056_v3 }
 0x720   : > { %2092 = vmatpush.bf16.msra.mxu0 %v2728_v4  ;;  %v2903_v6 = vld [vmem:[%s4192_s9] ss:$0 sm:$0xff] }
 0x724   : > { %2093 = vmatpush.bf16.msra.mxu0 %v2727_v5 }
 0x727   : > { %2682 = vmatmul.msk.bf16.vlgmr.msra.gmra.mxu0 %vm1194_vm1, %v2062_v9 }
 0x7a4   : > { %v2095_v7 = vpop.f32.mrf.mxu0 }
 0x7a5   : > { %v2096_v8 = vadd.f32 %v2903_v6, %v2095_v7 }
 0x7a7   : > { %2099 = vmax.xlane.f32.xlu0 %v2096_v8 }
 0x7ac   : > { %v2097_v10 = vpop.f32.mrf.mxu0 }
 0x81a   : > { %v2100_v11 = vpop.xlane.xlu0 %2099 }
 0x81b   : > { %v2101_v12 = vsub.f32 %v2096_v8, %v2100_v11 }
 0x81d   : > { %v2102_v13 = vmul.f32 1.442695, %v2101_v12 }
 0x81f   : > { %2904 = vpow2.f32 %v2102_v13 }
 0x825   : > { %v2905_v14 = vpop.eup %2904 }
 0x826   : > { %2104 = vadd.xlane.f32.xlu0 %v2905_v14 }
 0x899   : > { %v2105_v15 = vpop.xlane.xlu0 %2104 }
 0x89a   : > { %2906 = vlog2.f32 %v2105_v15 }
 0x8a0   : > { %v2907_v16 = vpop.eup %2906 }
 0x8a1   : > { %v2107_v17 = vmul.f32 0.6931472, %v2907_v16 }
 0x8a3   : > { %v2108_v18 = vsub.f32 %v2101_v12, %v2107_v17 }
 0x8a5   : > { %2109 = vst [vmem:[%s1119_s25] sm:$0xff] %v2108_v18 }
 0x8a6 PF: > { %s4193_s14 = sld [smem:[#allocation29_spill]]  ;;  %s2123_s22 = sshll.u32 %s1119_s25, 4  ;;  %s2124_s22 = int_to_ptr.vmem [resolvable:$true] %s2123_s22 }
 0x8a7   : > { %s4194_s4 = sld [smem:[#allocation26_spill]] }
 0x8a8   : > { %s4196_s29 = sld [smem:[#allocation59_spill]] }
 0x8ac   : > { %s2684_s23 = sshll.u32 %s4193_s14, 3 }
 0x8ad   : > { %s4197_s20 = sand.u32 1, %s4194_s4  }
 0x8ae   : > { %s2121_s1 = scalar_lea.hbm %s4196_s29, %s2684_s23  ;;  %s2111_s30 = scalar_lea.sflag [#allocation5], %s4197_s20 }
 0x8af   : > { %s2125_s2 = sshll.u32 %s2121_s1, 4  ;;  %s3266_s11 = scalar_lea.hbm %s4196_s29, 16  ;;  %s2126_s2 = int_to_ptr.hbm [resolvable:$true] %s2125_s2 }
 0x8b0   : > { %s3260_s7 = sshra.s32 %s2126_s2, 4  ;;  %s3261_s7 = int_to_ptr.hbm [resolvable:$true] %s3260_s7 }
 0x8b1   : > { %s3262_s28 = scalar_lea.hbm %s3261_s7, 8  ;;  %p3267_p2 = scmp.lt.s32.totalorder %s3261_s7, %s4196_s29 }
 0x8b2   : > { %p3263_p0 = scmp.ne.s32.totalorder %s3261_s7, %s3262_s28  ;;  %p3268_p9 = scmp.lt.s32.totalorder %s3266_s11, %s3262_s28 }
 0x8b4   : > { %p3264_p5 = pnand %p3263_p0, %p3613_p8  ;;  %p3269_p7 = por %p3268_p9, %p3267_p2 }
 0x8b6   : > { %p3265_p10 = pneg %p3264_p5 }
 0x8b8   : > { %p3270_p11 = pnand %p3269_p7, %p3265_p10 }
 0x8ba   : > { %3273 = shalt.err (!%p3270_p11)
}
 0x8bb   : > { %2755 = dma.vmem_to_hbm [thread:$0]  (%p3613_p8), %s2124_s22, 128, %s2126_s2, %s2111_s30  }
 0x8bc PF: > { %s4198_s21 = sld [smem:[#allocation31_spill]] }
 0x8bd   : > { %s4199_s25 = sld [smem:[#allocation25_spill]] }
 0x8c2   : > { %p2767_p1 = scmp.ge.s32.totalorder %s4198_s21, 2 }
 0x8c3   : > { %s2137_s15 = sand.u32 1, %s4199_s25  }
 0x8c4   : > { %p2762_p4 = pnand %p2767_p1, %p3620_p3  ;;  %s2138_s17 = scalar_lea.sflag [#allocation5], %s2137_s15 }
 0x8c6   : > { %p2763_p6 = pneg %p2762_p4 }
 0x8c8   : > { %3331 = dma.done.wait (%p2763_p6), %s2138_s17, 128  }
 0x8c9   : > { %3333 = vsyncadd (%p2763_p6), %s2138_s17, 4294967168  ;;  %s37_s4 = sadd.s32 1, %s4198_s21   ;;  %s4201_s1 = sld [smem:[#allocation23_spill]] }
 0x8ca   : > { %p34_p12 = scmp.ge.s32.totalorder %s37_s4, 6   ;;  %s4202_s22 = sld [smem:[#allocation24_spill]] }
 0x8cb   : > { %s4203_s23 = sld [smem:[#allocation35_spill]]  ;;  %s4210_s3 = smov %s3368_s27 }
 0x8cc   : > { %s4204_s24 = sld [smem:[#allocation26_spill]] }
 0x8cd   : > { %s4205_s2 = sld [smem:[#allocation27_spill]] }
 0x8ce   : > { %s4206_s25 = sld [smem:[#allocation36_spill]] }
 0x8cf   : > { %s4207_s26 = sld [smem:[#allocation30_spill]] }
 0x8d0   : > { %s4208_s8 = sld [smem:[#allocation32_spill]] }
 0x8d1   : > { %s4209_s28 = sld [smem:[#allocation33_spill]] }
 0x8d2   :  { %36 = sbr.rel (!%p34_p12) target bundleno = 31 (0x1f), region = 285 }
 0x8d6   : > { %s4211_s27 = smov %s4208_s8 }
 0x8d7   :  { %2144 = vsyncpa [#allocation4], 1 }
 0x8d8   :  { %2146 = vsyncpa [#allocation4 + $0x1], 1 }
 0x8d9   :  { %2147 = vsyncpa [#allocation7], 1 }
 0x8da   :  { %2148 = vsyncpa [#allocation5], 1 }
 0x8db   :  { %2150 = vsyncpa [#allocation5 + $0x1], 1 }

</bundles_post_ra>
